<compile_context>
chip_gen: v7x
topology: tpu7x:2x2x1
jax: 0.10.0
libtpu: 0.0.40
codegen_flags: <defaults>
</compile_context>

<pallas_src>
import functools
import math

import jax
import jax.numpy as jnp
from jax.experimental import pallas as pl
from jax.experimental.pallas import tpu as pltpu

_VMEM = pl.BlockSpec(memory_space=pltpu.MemorySpace.VMEM)
_HALF_LOG_2PI = 0.5 * math.log(2.0 * math.pi)

N_RES = 2           # residual blocks in the auto-encoder coders
N_FLOW_LAYERS = 2   # coupling layers per flow pass

_AUX_NAMES = ("loss", "reg", "rec", "loss_d", "loss_r", "kl",
              "prior_logprob", "conditional_logprob",
              "log_det", "conditional_log_det")


# ----------------------------------------------------------------------------
# The single fused forward kernel
# ----------------------------------------------------------------------------
def _fused_forward_kernel(x_ref, main_ref, wide_ref, out_ref, *,
                          main_off, wide_off, dims, batch):
    f32 = jnp.float32
    obs, state, act = dims["obs"], dims["state"], dims["act"]
    head_nh, nh = dims["head_nh"], dims["nh"]
    n_res, n_flow = dims["n_res"], dims["n_flow"]
    half = state // 2
    other = state - half

    def Wm(name):                     # static slice of the 128-lane weight slab
        r0, r, c = main_off[name]
        return main_ref[r0:r0 + r, 0:c]

    def Ww(name):                     # static slice of the 384-lane proj slab
        r0, r, c = wide_off[name]
        return wide_ref[r0:r0 + r, 0:c]

    def dense(xv, w, b, act_fn=False):
        y = jnp.dot(xv, w, preferred_element_type=f32) + b
        return jnp.maximum(y, 0.0) if act_fn else y

    def coder(prefix, xin):
        # residual-MLP coder (TODO(synk): SplineAutoEncoder source unavailable)
        h = dense(xin, Wm(f"{prefix}_inp_w"), Wm(f"{prefix}_inp_b"), True)
        for i in range(n_res):
            u = dense(h, Wm(f"{prefix}_res_w{2 * i}"), Wm(f"{prefix}_res_b{2 * i}"), True)
            u = dense(u, Wm(f"{prefix}_res_w{2 * i + 1}"), Wm(f"{prefix}_res_b{2 * i + 1}"))
            h = jnp.maximum(h + u, 0.0)
        return dense(h, Wm(f"{prefix}_out_w"), Wm(f"{prefix}_out_b"))

    # ---- unpack the single packed activation operand -------------------------
    x = x_ref[...]                                      # (2B, lanes)
    oo2 = x[:, 0:obs]                                   # rows [:B]=o, [B:]=o2
    o = x[0:batch, 0:obs]
    a = x[0:batch, obs:obs + act]
    r_t = x[0:batch, obs + act:obs + act + 1]
    d_t = x[0:batch, obs + act + 1:obs + act + 2]

    # ---- auto-encoder: ONE encoder pass over stacked [o; o2] -----------------
    # torch.no_grad() on encoder(o2) and c.detach(): forward no-ops here.
    # TODO(synk): reproduce as stop_gradient if a backward kernel is added.
    s_all = coder("enc", oo2)                           # (2B, state)
    s = s_all[0:batch]
    s2 = s_all[batch:2 * batch]
    ohat = coder("dec", s)                              # (B, obs)

    # ---- fused (s, a) projection: head layer-1 + all cond-flow s/a terms -----
    proj = (jnp.dot(s, Ww("proj_ws"), preferred_element_type=f32)
            + jnp.dot(a, Ww("proj_wa"), preferred_element_type=f32)
            + Ww("proj_b"))                             # (B, 2*head_nh + n_flow*2*nh)
    h1 = jnp.maximum(proj[:, 0:2 * head_nh], 0.0)       # fused r|d head layer 1

    # ---- r / d heads: layer-2 split into two 128x128 matmuls -----------------
    h2_r = dense(h1[:, 0:head_nh], Wm("head_w2r"), Wm("head_b2r"), True)
    h2_d = dense(h1[:, head_nh:2 * head_nh], Wm("head_w2d"), Wm("head_b2d"), True)
    b3 = Wm("head_b3")                                  # (1, 2)
    rhat = jnp.dot(h2_r, Wm("head_w3r"), preferred_element_type=f32) + b3[:, 0:1]
    dhat = jnp.dot(h2_d, Wm("head_w3d"), preferred_element_type=f32) + b3[:, 1:2]

    # ---- normalizing flow: cond + uncond passes fused (lanes [u | c]) --------
    # TODO(synk): rational-quadratic spline couplings (B=5, K=20) unavailable;
    # bounded affine couplings used as a stand-in.
    za = jnp.concatenate([s2[:, 0:half], s2[:, 0:half]], axis=1)        # (B, 2*half)
    zb = jnp.concatenate([s2[:, half:state], s2[:, half:state]], axis=1)
    logdet_u = jnp.zeros((batch, 1), f32)
    logdet_c = jnp.zeros((batch, 1), f32)
    for i in range(n_flow):
        base = 2 * head_nh + i * 2 * nh
        pre = (jnp.dot(za, Wm(f"flow_w0_{i}"), preferred_element_type=f32)
               + proj[:, base:base + 2 * nh])           # s/a terms + biases baked in
        hh = jnp.maximum(pre, 0.0)
        hh = dense(hh, Wm(f"flow_w1_{i}"), Wm(f"flow_b1_{i}"), True)
        out2 = dense(hh, Wm(f"flow_w2_{i}"), Wm(f"flow_b2_{i}"))        # (B, 4*other)
        shift = out2[:, 0:2 * other]                    # [shift_u | shift_c]
        logs = jnp.tanh(out2[:, 2 * other:4 * other])   # [logs_u  | logs_c ]
        zb_new = zb * jnp.exp(logs) + shift
        logdet_u = logdet_u + jnp.sum(logs[:, 0:other], axis=-1, keepdims=True)
        logdet_c = logdet_c + jnp.sum(logs[:, other:2 * other], axis=-1, keepdims=True)
        za, zb = zb_new, za                             # half swap (both passes)

    def _logprob(za_h, zb_h):
        return (jnp.sum(-0.5 * za_h * za_h, axis=-1, keepdims=True)
                + jnp.sum(-0.5 * zb_h * zb_h, axis=-1, keepdims=True)
                - state * _HALF_LOG_2PI)

    prior_lp = _logprob(za[:, 0:half], zb[:, 0:other])
    cond_lp = _logprob(za[:, half:2 * half], zb[:, other:2 * other])

    # ---- losses (all reductions stay in-kernel) ------------------------------
    diff = rhat - r_t                                   # smooth_l1, reduction='sum'
    ad = jnp.abs(diff)
    loss_r = jnp.sum(jnp.where(ad < 1.0, 0.5 * diff * diff, ad - 0.5), keepdims=True)

    xx = dhat                                           # bce_with_logits, 'sum'
    loss_d = jnp.sum(jnp.maximum(xx, 0.0) - xx * d_t
                     + jnp.log(1.0 + jnp.exp(-jnp.abs(xx))), keepdims=True)

    # matches the torch expression exactly (no epsilon; log(0) -> -inf as torch)
    reg_vec = jnp.mean(s * s, axis=0, keepdims=True)                    # (1, S)
    reg = jnp.sum(reg_vec - jnp.log(reg_vec), axis=-1, keepdims=True)

    do = o - ohat
    rec = jnp.mean(jnp.sum(do * do, axis=-1, keepdims=True), axis=0, keepdims=True)

    prior_m = jnp.mean(prior_lp, axis=0, keepdims=True)
    cond_m = jnp.mean(cond_lp, axis=0, keepdims=True)
    ld_m = jnp.mean(logdet_u, axis=0, keepdims=True)
    cld_m = jnp.mean(logdet_c, axis=0, keepdims=True)
    # TODO(synk): exact KL of the original flow model unavailable; use the
    # per-sample density gap between conditional and unconditional passes.
    kl_m = (cond_m + cld_m) - (prior_m + ld_m)
    nll = -prior_m - cond_m - ld_m - cld_m

    loss = 0.01 * reg + rec + loss_r + loss_d + nll + 0.1 * kl_m

    # ---- single lane-dense (2B, 128) output ----------------------------------
    # rows [:B] : s (lanes [:state], zero-padded to 128)
    # rows [B:] : aux scalars broadcast across rows (lanes [:10])
    lanes = out_ref.shape[1]
    s_block = jnp.concatenate([s, jnp.zeros((batch, lanes - state), f32)], axis=1)

    vals = (loss, reg, rec, loss_d, loss_r, kl_m, prior_m, cond_m, ld_m, cld_m)
    lane = jax.lax.broadcasted_iota(jnp.int32, (batch, lanes), 1)
    parts = [jnp.where(lane == k, v, 0.0) for k, v in enumerate(vals)]
    while len(parts) > 1:                               # balanced select/add tree
        nxt = [parts[j] + parts[j + 1] for j in range(0, len(parts) - 1, 2)]
        if len(parts) % 2:
            nxt.append(parts[-1])
        parts = nxt
    scal_block = parts[0]

    out_ref[0:batch, :] = s_block
    out_ref[batch:2 * batch, :] = scal_block


# ----------------------------------------------------------------------------
# FlowWorldModel.forward wrapper (one pallas_call, tiny epilogue slices only)
# ----------------------------------------------------------------------------
def flow_world_model_forward(main_slab, wide_slab, o, a, r, o2, d, *,
                             main_off, wide_off, dims):
    batch, obs = o.shape
    act = a.shape[1]
    state = dims["state"]
    emb, head_nh, nh = dims["emb"], dims["head_nh"], dims["nh"]
    n_res, n_flow = dims["n_res"], dims["n_flow"]
    half = state // 2
    other = state - half

    # pack the five activations into ONE lane-dense operand (single input DMA)
    x_lanes = max(128, -(-(obs + act + 2) // 128) * 128)
    x = jnp.zeros((2 * batch, x_lanes), jnp.float32)
    x = x.at[:batch, 0:obs].set(o.astype(jnp.float32))
    x = x.at[batch:, 0:obs].set(o2.astype(jnp.float32))
    x = x.at[:batch, obs:obs + act].set(a.astype(jnp.float32))
    x = x.at[:batch, obs + act].set(r.astype(jnp.float32))
    x = x.at[:batch, obs + act + 1].set(d.astype(jnp.float32))

    kernel = functools.partial(_fused_forward_kernel, main_off=main_off,
                               wide_off=wide_off, dims=dims, batch=batch)

    # advisory cost estimate so XLA does not over-serialize around the call
    pw = 2 * head_nh + n_flow * 2 * nh
    macs = (2 * batch * (obs * emb + 2 * n_res * emb * emb + emb * state)
            + batch * (state * emb + 2 * n_res * emb * emb + emb * obs)
            + batch * (state + act) * pw
            + batch * (2 * head_nh * head_nh + 2 * head_nh)
            + batch * n_flow * (2 * half * 2 * nh + 4 * nh * nh + 2 * nh * 4 * other))
    cost = pl.CostEstimate(
        flops=int(2 * macs),
        transcendentals=int(batch * (4 * other * n_flow + 4) + state),
        bytes_accessed=int(4 * (x.size + main_slab.size + wide_slab.size
                                + 2 * batch * 128)))

    out = pl.pallas_call(
        kernel,
        out_shape=jax.ShapeDtypeStruct((2 * batch, 128), jnp.float32),
        in_specs=[_VMEM, _VMEM, _VMEM],
        out_specs=_VMEM,
        cost_estimate=cost,
    )(x, main_slab, wide_slab)

    s = out[:batch, :state]
    scal = out[batch]
    aux = {name: scal[k] for k, name in enumerate(_AUX_NAMES)}
    return aux["loss"], aux, s


# ----------------------------------------------------------------------------
# Parameter init (deterministic) + host-side packing into lane-dense slabs
# ----------------------------------------------------------------------------
def _init_linear(key, fan_in, fan_out):
    kw, kb = jax.random.split(key)
    lim = 1.0 / math.sqrt(fan_in)
    w = jax.random.uniform(kw, (fan_in, fan_out), jnp.float32, -lim, lim)
    b = jax.random.uniform(kb, (fan_out,), jnp.float32, -lim, lim)
    return w, b


def _init_mlp(key, sizes):
    keys = jax.random.split(key, len(sizes) - 1)
    return [_init_linear(k, i, o) for k, i, o in zip(keys, sizes[:-1], sizes[1:])]


def _init_coder(key, in_dim, out_dim, emb, n_res):
    keys = jax.random.split(key, 2 + 2 * n_res)
    w, b = _init_linear(keys[0], in_dim, emb)
    layers = {"inp_w": w, "inp_b": b[None, :]}
    for j in range(2 * n_res):
        w, b = _init_linear(keys[1 + j], emb, emb)
        layers[f"res_w{j}"] = w
        layers[f"res_b{j}"] = b[None, :]
    w, b = _init_linear(keys[1 + 2 * n_res], emb, out_dim)
    layers["out_w"] = w
    layers["out_b"] = b[None, :]
    return layers


def _pack_slab(entries, lane_width):
    """Pack 2-D arrays into one (rows, lane_width) slab at 8-aligned row offsets."""
    blocks, offsets, cur = [], {}, 0
    for name, arr in entries:
        rr, cc = arr.shape
        assert cc <= lane_width, (name, arr.shape, lane_width)
        r_pad = -(-rr // 8) * 8
        block = jnp.zeros((r_pad, lane_width), jnp.float32)
        block = block.at[:rr, :cc].set(arr.astype(jnp.float32))
        blocks.append(block)
        offsets[name] = (cur, rr, cc)
        cur += r_pad
    return jnp.concatenate(blocks, axis=0), offsets


def init_flow_world_model(key, obs_dim, state_dim, act_dim,
                          nh=32, emb=16, head_nh=128):
    assert state_dim % 2 == 0, "fused flow packing assumes an even state_dim"
    half = state_dim // 2
    other = state_dim - half
    cond_dim = state_dim + act_dim
    n_flow = N_FLOW_LAYERS

    k_enc, k_dec, k_heads, k_flow = jax.random.split(key, 4)
    enc = _init_coder(k_enc, obs_dim, state_dim, emb, N_RES)
    dec = _init_coder(k_dec, state_dim, obs_dim, emb, N_RES)

    # r / d heads (MLP [state+act, 128, 128, 1], relu)
    kr, kd = jax.random.split(k_heads)
    (rw1, rb1), (rw2, rb2), (rw3, rb3) = _init_mlp(kr, [state_dim + act_dim, head_nh, head_nh, 1])
    (dw1, db1), (dw2, db2), (dw3, db3) = _init_mlp(kd, [state_dim + act_dim, head_nh, head_nh, 1])

    # flow coupling nets
    # TODO(synk): ConditionalNormalizingFlowModel uses rational-quadratic spline
    # couplings (B=5, K=20); source unavailable, bounded affine couplings used.
    fkeys = jax.random.split(k_flow, 2 * n_flow)
    uncond = [_init_mlp(fkeys[i], [half, nh, nh, 2 * other]) for i in range(n_flow)]
    cond = [_init_mlp(fkeys[n_flow + i], [half + cond_dim, nh, nh, 2 * other])
            for i in range(n_flow)]

    # fused (s, a) projection: head layer-1 + cond-flow s/a/bias terms
    pw = 2 * head_nh + n_flow * 2 * nh
    proj_ws = jnp.zeros((state_dim, pw), jnp.float32)
    proj_wa = jnp.zeros((act_dim, pw), jnp.float32)
    proj_b = jnp.zeros((1, pw), jnp.float32)
    proj_ws = proj_ws.at[:, 0:head_nh].set(rw1[:state_dim])
    proj_ws = proj_ws.at[:, head_nh:2 * head_nh].set(dw1[:state_dim])
    proj_wa = proj_wa.at[:, 0:head_nh].set(rw1[state_dim:])
    proj_wa = proj_wa.at[:, head_nh:2 * head_nh].set(dw1[state_dim:])
    proj_b = proj_b.at[0, 0:head_nh].set(rb1)
    proj_b = proj_b.at[0, head_nh:2 * head_nh].set(db1)

    flow_entries = []
    for i in range(n_flow):
        (u0w, u0b), (u1w, u1b), (u2w, u2b) = uncond[i]
        (c0w, c0b), (c1w, c1b), (c2w, c2b) = cond[i]
        base = 2 * head_nh + i * 2 * nh
        # uncond block: bias only; cond block: s/a weights + bias
        proj_b = proj_b.at[0, base:base + nh].set(u0b)
        proj_ws = proj_ws.at[:, base + nh:base + 2 * nh].set(c0w[half:half + state_dim])
        proj_wa = proj_wa.at[:, base + nh:base + 2 * nh].set(c0w[half + state_dim:])
        proj_b = proj_b.at[0, base + nh:base + 2 * nh].set(c0b)

        w0f = jnp.zeros((2 * half, 2 * nh), jnp.float32)
        w0f = w0f.at[:half, :nh].set(u0w).at[half:, nh:].set(c0w[:half])
        w1f = jnp.zeros((2 * nh, 2 * nh), jnp.float32)
        w1f = w1f.at[:nh, :nh].set(u1w).at[nh:, nh:].set(c1w)
        b1f = jnp.concatenate([u1b, c1b])[None, :]
        w2f = jnp.zeros((2 * nh, 4 * other), jnp.float32)
        w2f = w2f.at[:nh, 0:other].set(u2w[:, :other])               # shift_u
        w2f = w2f.at[nh:, other:2 * other].set(c2w[:, :other])       # shift_c
        w2f = w2f.at[:nh, 2 * other:3 * other].set(u2w[:, other:])   # logs_u
        w2f = w2f.at[nh:, 3 * other:4 * other].set(c2w[:, other:])   # logs_c
        b2f = jnp.concatenate([u2b[:other], c2b[:other],
                               u2b[other:], c2b[other:]])[None, :]
        flow_entries += [(f"flow_w0_{i}", w0f), (f"flow_w1_{i}", w1f),
                         (f"flow_b1_{i}", b1f), (f"flow_w2_{i}", w2f),
                         (f"flow_b2_{i}", b2f)]

    head_entries = [("head_w2r", rw2), ("head_b2r", rb2[None, :]),
                    ("head_w2d", dw2), ("head_b2d", db2[None, :]),
                    ("head_w3r", rw3), ("head_w3d", dw3),
                    ("head_b3", jnp.concatenate([rb3, db3])[None, :])]

    main_entries = ([(f"enc_{k}", v) for k, v in enc.items()]
                    + [(f"dec_{k}", v) for k, v in dec.items()]
                    + head_entries + flow_entries)
    main_slab, main_off = _pack_slab(main_entries, 128)
    wide_slab, wide_off = _pack_slab(
        [("proj_ws", proj_ws), ("proj_wa", proj_wa), ("proj_b", proj_b)], pw)

    dims = dict(obs=obs_dim, state=state_dim, act=act_dim, emb=emb,
                head_nh=head_nh, nh=nh, n_res=N_RES, n_flow=n_flow)
    return {"main": main_slab, "wide": wide_slab,
            "main_off": main_off, "wide_off": wide_off, "dims": dims}


# ----------------------------------------------------------------------------
if __name__ == "__main__":
    obs_dim, state_dim, act_dim, batch = 16, 8, 4, 8

    model = init_flow_world_model(jax.random.PRNGKey(42), obs_dim, state_dim, act_dim)

    key = jax.random.PRNGKey(0)
    ko, ka, kr, ko2, kd = jax.random.split(key, 5)
    o = jax.random.normal(ko, (batch, obs_dim), jnp.float32)
    a = jax.random.normal(ka, (batch, act_dim), jnp.float32)
    r = jax.random.normal(kr, (batch,), jnp.float32)
    o2 = jax.random.normal(ko2, (batch, obs_dim), jnp.float32)
    d = (jax.random.uniform(kd, (batch,)) < 0.5).astype(jnp.float32)

    fwd = jax.jit(functools.partial(
        flow_world_model_forward,
        main_off=model["main_off"], wide_off=model["wide_off"],
        dims=model["dims"]))
    loss, aux, s = fwd(model["main"], model["wide"], o, a, r, o2, d)
    jax.block_until_ready((loss, aux, s))
    assert bool(jnp.isfinite(loss)), "non-finite loss"
    print("KERNEL_OK")
</pallas_src>

<mosaic_0001>
module attributes {stable_mosaic.version = 11 : i64} {
  func.func @_fused_forward_kernel(%arg0: memref<16x128xf32, #tpu.memory_space<vmem>>, %arg1: memref<1120x128xf32, #tpu.memory_space<vmem>>, %arg2: memref<24x384xf32, #tpu.memory_space<vmem>>, %arg3: memref<16x128xf32, #tpu.memory_space<vmem>>) attributes {dimension_semantics = [], scalar_prefetch = 0 : i64, scratch_operands = 0 : i64, tpu.core_type = #tpu.core_type<tc>} {
    %c0 = arith.constant 0 : index
    %c0_0 = arith.constant 0 : index
    %0 = vector.load %arg0[%c0, %c0_0] : memref<16x128xf32, #tpu.memory_space<vmem>>, vector<16x128xf32>
    %1 = vector.extract_strided_slice %0 {offsets = [0, 0], sizes = [16, 16], strides = [1, 1]} : vector<16x128xf32> to vector<16x16xf32>
    %2 = vector.extract_strided_slice %0 {offsets = [0, 0], sizes = [8, 16], strides = [1, 1]} : vector<16x128xf32> to vector<8x16xf32>
    %3 = vector.extract_strided_slice %0 {offsets = [0, 16], sizes = [8, 4], strides = [1, 1]} : vector<16x128xf32> to vector<8x4xf32>
    %4 = vector.extract_strided_slice %0 {offsets = [0, 20], sizes = [8, 1], strides = [1, 1]} : vector<16x128xf32> to vector<8x1xf32>
    %5 = vector.extract_strided_slice %0 {offsets = [0, 21], sizes = [8, 1], strides = [1, 1]} : vector<16x128xf32> to vector<8x1xf32>
    %c0_1 = arith.constant 0 : index
    %c0_2 = arith.constant 0 : index
    %6 = vector.load %arg1[%c0_1, %c0_2] : memref<1120x128xf32, #tpu.memory_space<vmem>>, vector<16x16xf32>
    %c16 = arith.constant 16 : index
    %c0_3 = arith.constant 0 : index
    %7 = vector.load %arg1[%c16, %c0_3] : memref<1120x128xf32, #tpu.memory_space<vmem>>, vector<1x16xf32>
    %cst = arith.constant dense<0.000000e+00> : vector<16x16xf32>
    %8 = tpu.matmul %1, %6, %cst {dimension_numbers = #tpu.dot_dimension_numbers<[1], [0], [0], [1], [0, 0, 1, 1], [], []>} : vector<16x16xf32>, vector<16x16xf32>, vector<16x16xf32> -> vector<16x16xf32>
    %9 = vector.broadcast %7 : vector<1x16xf32> to vector<16x16xf32>
    %10 = arith.addf %8, %9 : vector<16x16xf32>
    %cst_4 = arith.constant 0.000000e+00 : f32
    %11 = vector.broadcast %cst_4 : f32 to vector<16x16xf32>
    %12 = arith.maximumf %10, %11 : vector<16x16xf32>
    %c24 = arith.constant 24 : index
    %c0_5 = arith.constant 0 : index
    %13 = vector.load %arg1[%c24, %c0_5] : memref<1120x128xf32, #tpu.memory_space<vmem>>, vector<16x16xf32>
    %c40 = arith.constant 40 : index
    %c0_6 = arith.constant 0 : index
    %14 = vector.load %arg1[%c40, %c0_6] : memref<1120x128xf32, #tpu.memory_space<vmem>>, vector<1x16xf32>
    %cst_7 = arith.constant dense<0.000000e+00> : vector<16x16xf32>
    %15 = tpu.matmul %12, %13, %cst_7 {dimension_numbers = #tpu.dot_dimension_numbers<[1], [0], [0], [1], [0, 0, 1, 1], [], []>} : vector<16x16xf32>, vector<16x16xf32>, vector<16x16xf32> -> vector<16x16xf32>
    %16 = vector.broadcast %14 : vector<1x16xf32> to vector<16x16xf32>
    %17 = arith.addf %15, %16 : vector<16x16xf32>
    %cst_8 = arith.constant 0.000000e+00 : f32
    %18 = vector.broadcast %cst_8 : f32 to vector<16x16xf32>
    %19 = arith.maximumf %17, %18 : vector<16x16xf32>
    %c48 = arith.constant 48 : index
    %c0_9 = arith.constant 0 : index
    %20 = vector.load %arg1[%c48, %c0_9] : memref<1120x128xf32, #tpu.memory_space<vmem>>, vector<16x16xf32>
    %c64 = arith.constant 64 : index
    %c0_10 = arith.constant 0 : index
    %21 = vector.load %arg1[%c64, %c0_10] : memref<1120x128xf32, #tpu.memory_space<vmem>>, vector<1x16xf32>
    %cst_11 = arith.constant dense<0.000000e+00> : vector<16x16xf32>
    %22 = tpu.matmul %19, %20, %cst_11 {dimension_numbers = #tpu.dot_dimension_numbers<[1], [0], [0], [1], [0, 0, 1, 1], [], []>} : vector<16x16xf32>, vector<16x16xf32>, vector<16x16xf32> -> vector<16x16xf32>
    %23 = vector.broadcast %21 : vector<1x16xf32> to vector<16x16xf32>
    %24 = arith.addf %22, %23 : vector<16x16xf32>
    %25 = arith.addf %12, %24 : vector<16x16xf32>
    %cst_12 = arith.constant 0.000000e+00 : f32
    %26 = vector.broadcast %cst_12 : f32 to vector<16x16xf32>
    %27 = arith.maximumf %25, %26 : vector<16x16xf32>
    %c72 = arith.constant 72 : index
    %c0_13 = arith.constant 0 : index
    %28 = vector.load %arg1[%c72, %c0_13] : memref<1120x128xf32, #tpu.memory_space<vmem>>, vector<16x16xf32>
    %c88 = arith.constant 88 : index
    %c0_14 = arith.constant 0 : index
    %29 = vector.load %arg1[%c88, %c0_14] : memref<1120x128xf32, #tpu.memory_space<vmem>>, vector<1x16xf32>
    %cst_15 = arith.constant dense<0.000000e+00> : vector<16x16xf32>
    %30 = tpu.matmul %27, %28, %cst_15 {dimension_numbers = #tpu.dot_dimension_numbers<[1], [0], [0], [1], [0, 0, 1, 1], [], []>} : vector<16x16xf32>, vector<16x16xf32>, vector<16x16xf32> -> vector<16x16xf32>
    %31 = vector.broadcast %29 : vector<1x16xf32> to vector<16x16xf32>
    %32 = arith.addf %30, %31 : vector<16x16xf32>
    %cst_16 = arith.constant 0.000000e+00 : f32
    %33 = vector.broadcast %cst_16 : f32 to vector<16x16xf32>
    %34 = arith.maximumf %32, %33 : vector<16x16xf32>
    %c96 = arith.constant 96 : index
    %c0_17 = arith.constant 0 : index
    %35 = vector.load %arg1[%c96, %c0_17] : memref<1120x128xf32, #tpu.memory_space<vmem>>, vector<16x16xf32>
    %c112 = arith.constant 112 : index
    %c0_18 = arith.constant 0 : index
    %36 = vector.load %arg1[%c112, %c0_18] : memref<1120x128xf32, #tpu.memory_space<vmem>>, vector<1x16xf32>
    %cst_19 = arith.constant dense<0.000000e+00> : vector<16x16xf32>
    %37 = tpu.matmul %34, %35, %cst_19 {dimension_numbers = #tpu.dot_dimension_numbers<[1], [0], [0], [1], [0, 0, 1, 1], [], []>} : vector<16x16xf32>, vector<16x16xf32>, vector<16x16xf32> -> vector<16x16xf32>
    %38 = vector.broadcast %36 : vector<1x16xf32> to vector<16x16xf32>
    %39 = arith.addf %37, %38 : vector<16x16xf32>
    %40 = arith.addf %27, %39 : vector<16x16xf32>
    %cst_20 = arith.constant 0.000000e+00 : f32
    %41 = vector.broadcast %cst_20 : f32 to vector<16x16xf32>
    %42 = arith.maximumf %40, %41 : vector<16x16xf32>
    %c120 = arith.constant 120 : index
    %c0_21 = arith.constant 0 : index
    %43 = vector.load %arg1[%c120, %c0_21] : memref<1120x128xf32, #tpu.memory_space<vmem>>, vector<16x8xf32>
    %c136 = arith.constant 136 : index
    %c0_22 = arith.constant 0 : index
    %44 = vector.load %arg1[%c136, %c0_22] : memref<1120x128xf32, #tpu.memory_space<vmem>>, vector<1x8xf32>
    %cst_23 = arith.constant dense<0.000000e+00> : vector<16x8xf32>
    %45 = tpu.matmul %42, %43, %cst_23 {dimension_numbers = #tpu.dot_dimension_numbers<[1], [0], [0], [1], [0, 0, 1, 1], [], []>} : vector<16x16xf32>, vector<16x8xf32>, vector<16x8xf32> -> vector<16x8xf32>
    %46 = vector.broadcast %44 : vector<1x8xf32> to vector<16x8xf32>
    %47 = arith.addf %45, %46 : vector<16x8xf32>
    %48 = vector.extract_strided_slice %47 {offsets = [0, 0], sizes = [8, 8], strides = [1, 1]} : vector<16x8xf32> to vector<8x8xf32>
    %49 = vector.extract_strided_slice %47 {offsets = [8, 0], sizes = [8, 8], strides = [1, 1]} : vector<16x8xf32> to vector<8x8xf32>
    %c144 = arith.constant 144 : index
    %c0_24 = arith.constant 0 : index
    %50 = vector.load %arg1[%c144, %c0_24] : memref<1120x128xf32, #tpu.memory_space<vmem>>, vector<8x16xf32>
    %c152 = arith.constant 152 : index
    %c0_25 = arith.constant 0 : index
    %51 = vector.load %arg1[%c152, %c0_25] : memref<1120x128xf32, #tpu.memory_space<vmem>>, vector<1x16xf32>
    %cst_26 = arith.constant dense<0.000000e+00> : vector<8x16xf32>
    %52 = tpu.matmul %48, %50, %cst_26 {dimension_numbers = #tpu.dot_dimension_numbers<[1], [0], [0], [1], [0, 0, 1, 1], [], []>} : vector<8x8xf32>, vector<8x16xf32>, vector<8x16xf32> -> vector<8x16xf32>
    %53 = vector.broadcast %51 : vector<1x16xf32> to vector<8x16xf32>
    %54 = arith.addf %52, %53 : vector<8x16xf32>
    %cst_27 = arith.constant 0.000000e+00 : f32
    %55 = vector.broadcast %cst_27 : f32 to vector<8x16xf32>
    %56 = arith.maximumf %54, %55 : vector<8x16xf32>
    %c160 = arith.constant 160 : index
    %c0_28 = arith.constant 0 : index
    %57 = vector.load %arg1[%c160, %c0_28] : memref<1120x128xf32, #tpu.memory_space<vmem>>, vector<16x16xf32>
    %c176 = arith.constant 176 : index
    %c0_29 = arith.constant 0 : index
    %58 = vector.load %arg1[%c176, %c0_29] : memref<1120x128xf32, #tpu.memory_space<vmem>>, vector<1x16xf32>
    %cst_30 = arith.constant dense<0.000000e+00> : vector<8x16xf32>
    %59 = tpu.matmul %56, %57, %cst_30 {dimension_numbers = #tpu.dot_dimension_numbers<[1], [0], [0], [1], [0, 0, 1, 1], [], []>} : vector<8x16xf32>, vector<16x16xf32>, vector<8x16xf32> -> vector<8x16xf32>
    %60 = vector.broadcast %58 : vector<1x16xf32> to vector<8x16xf32>
    %61 = arith.addf %59, %60 : vector<8x16xf32>
    %cst_31 = arith.constant 0.000000e+00 : f32
    %62 = vector.broadcast %cst_31 : f32 to vector<8x16xf32>
    %63 = arith.maximumf %61, %62 : vector<8x16xf32>
    %c184 = arith.constant 184 : index
    %c0_32 = arith.constant 0 : index
    %64 = vector.load %arg1[%c184, %c0_32] : memref<1120x128xf32, #tpu.memory_space<vmem>>, vector<16x16xf32>
    %c200 = arith.constant 200 : index
    %c0_33 = arith.constant 0 : index
    %65 = vector.load %arg1[%c200, %c0_33] : memref<1120x128xf32, #tpu.memory_space<vmem>>, vector<1x16xf32>
    %cst_34 = arith.constant dense<0.000000e+00> : vector<8x16xf32>
    %66 = tpu.matmul %63, %64, %cst_34 {dimension_numbers = #tpu.dot_dimension_numbers<[1], [0], [0], [1], [0, 0, 1, 1], [], []>} : vector<8x16xf32>, vector<16x16xf32>, vector<8x16xf32> -> vector<8x16xf32>
    %67 = vector.broadcast %65 : vector<1x16xf32> to vector<8x16xf32>
    %68 = arith.addf %66, %67 : vector<8x16xf32>
    %69 = arith.addf %56, %68 : vector<8x16xf32>
    %cst_35 = arith.constant 0.000000e+00 : f32
    %70 = vector.broadcast %cst_35 : f32 to vector<8x16xf32>
    %71 = arith.maximumf %69, %70 : vector<8x16xf32>
    %c208 = arith.constant 208 : index
    %c0_36 = arith.constant 0 : index
    %72 = vector.load %arg1[%c208, %c0_36] : memref<1120x128xf32, #tpu.memory_space<vmem>>, vector<16x16xf32>
    %c224 = arith.constant 224 : index
    %c0_37 = arith.constant 0 : index
    %73 = vector.load %arg1[%c224, %c0_37] : memref<1120x128xf32, #tpu.memory_space<vmem>>, vector<1x16xf32>
    %cst_38 = arith.constant dense<0.000000e+00> : vector<8x16xf32>
    %74 = tpu.matmul %71, %72, %cst_38 {dimension_numbers = #tpu.dot_dimension_numbers<[1], [0], [0], [1], [0, 0, 1, 1], [], []>} : vector<8x16xf32>, vector<16x16xf32>, vector<8x16xf32> -> vector<8x16xf32>
    %75 = vector.broadcast %73 : vector<1x16xf32> to vector<8x16xf32>
    %76 = arith.addf %74, %75 : vector<8x16xf32>
    %cst_39 = arith.constant 0.000000e+00 : f32
    %77 = vector.broadcast %cst_39 : f32 to vector<8x16xf32>
    %78 = arith.maximumf %76, %77 : vector<8x16xf32>
    %c232 = arith.constant 232 : index
    %c0_40 = arith.constant 0 : index
    %79 = vector.load %arg1[%c232, %c0_40] : memref<1120x128xf32, #tpu.memory_space<vmem>>, vector<16x16xf32>
    %c248 = arith.constant 248 : index
    %c0_41 = arith.constant 0 : index
    %80 = vector.load %arg1[%c248, %c0_41] : memref<1120x128xf32, #tpu.memory_space<vmem>>, vector<1x16xf32>
    %cst_42 = arith.constant dense<0.000000e+00> : vector<8x16xf32>
    %81 = tpu.matmul %78, %79, %cst_42 {dimension_numbers = #tpu.dot_dimension_numbers<[1], [0], [0], [1], [0, 0, 1, 1], [], []>} : vector<8x16xf32>, vector<16x16xf32>, vector<8x16xf32> -> vector<8x16xf32>
    %82 = vector.broadcast %80 : vector<1x16xf32> to vector<8x16xf32>
    %83 = arith.addf %81, %82 : vector<8x16xf32>
    %84 = arith.addf %71, %83 : vector<8x16xf32>
    %cst_43 = arith.constant 0.000000e+00 : f32
    %85 = vector.broadcast %cst_43 : f32 to vector<8x16xf32>
    %86 = arith.maximumf %84, %85 : vector<8x16xf32>
    %c256 = arith.constant 256 : index
    %c0_44 = arith.constant 0 : index
    %87 = vector.load %arg1[%c256, %c0_44] : memref<1120x128xf32, #tpu.memory_space<vmem>>, vector<16x16xf32>
    %c272 = arith.constant 272 : index
    %c0_45 = arith.constant 0 : index
    %88 = vector.load %arg1[%c272, %c0_45] : memref<1120x128xf32, #tpu.memory_space<vmem>>, vector<1x16xf32>
    %cst_46 = arith.constant dense<0.000000e+00> : vector<8x16xf32>
    %89 = tpu.matmul %86, %87, %cst_46 {dimension_numbers = #tpu.dot_dimension_numbers<[1], [0], [0], [1], [0, 0, 1, 1], [], []>} : vector<8x16xf32>, vector<16x16xf32>, vector<8x16xf32> -> vector<8x16xf32>
    %90 = vector.broadcast %88 : vector<1x16xf32> to vector<8x16xf32>
    %91 = arith.addf %89, %90 : vector<8x16xf32>
    %c0_47 = arith.constant 0 : index
    %c0_48 = arith.constant 0 : index
    %92 = vector.load %arg2[%c0_47, %c0_48] : memref<24x384xf32, #tpu.memory_space<vmem>>, vector<8x384xf32>
    %cst_49 = arith.constant dense<0.000000e+00> : vector<8x384xf32>
    %93 = tpu.matmul %48, %92, %cst_49 {dimension_numbers = #tpu.dot_dimension_numbers<[1], [0], [0], [1], [0, 0, 1, 1], [], []>} : vector<8x8xf32>, vector<8x384xf32>, vector<8x384xf32> -> vector<8x384xf32>
    %c8 = arith.constant 8 : index
    %c0_50 = arith.constant 0 : index
    %94 = vector.load %arg2[%c8, %c0_50] : memref<24x384xf32, #tpu.memory_space<vmem>>, vector<4x384xf32>
    %cst_51 = arith.constant dense<0.000000e+00> : vector<8x384xf32>
    %95 = tpu.matmul %3, %94, %cst_51 {dimension_numbers = #tpu.dot_dimension_numbers<[1], [0], [0], [1], [0, 0, 1, 1], [], []>} : vector<8x4xf32>, vector<4x384xf32>, vector<8x384xf32> -> vector<8x384xf32>
    %96 = arith.addf %93, %95 : vector<8x384xf32>
    %c16_52 = arith.constant 16 : index
    %c0_53 = arith.constant 0 : index
    %97 = vector.load %arg2[%c16_52, %c0_53] : memref<24x384xf32, #tpu.memory_space<vmem>>, vector<1x384xf32>
    %98 = vector.broadcast %97 : vector<1x384xf32> to vector<8x384xf32>
    %99 = arith.addf %96, %98 : vector<8x384xf32>
    %100 = vector.extract_strided_slice %99 {offsets = [0, 0], sizes = [8, 256], strides = [1, 1]} : vector<8x384xf32> to vector<8x256xf32>
    %cst_54 = arith.constant 0.000000e+00 : f32
    %101 = vector.broadcast %cst_54 : f32 to vector<8x256xf32>
    %102 = arith.maximumf %100, %101 : vector<8x256xf32>
    %103 = vector.extract_strided_slice %102 {offsets = [0, 0], sizes = [8, 128], strides = [1, 1]} : vector<8x256xf32> to vector<8x128xf32>
    %c280 = arith.constant 280 : index
    %c0_55 = arith.constant 0 : index
    %104 = vector.load %arg1[%c280, %c0_55] : memref<1120x128xf32, #tpu.memory_space<vmem>>, vector<128x128xf32>
    %c408 = arith.constant 408 : index
    %c0_56 = arith.constant 0 : index
    %105 = vector.load %arg1[%c408, %c0_56] : memref<1120x128xf32, #tpu.memory_space<vmem>>, vector<1x128xf32>
    %cst_57 = arith.constant dense<0.000000e+00> : vector<8x128xf32>
    %106 = tpu.matmul %103, %104, %cst_57 {dimension_numbers = #tpu.dot_dimension_numbers<[1], [0], [0], [1], [0, 0, 1, 1], [], []>} : vector<8x128xf32>, vector<128x128xf32>, vector<8x128xf32> -> vector<8x128xf32>
    %107 = vector.broadcast %105 : vector<1x128xf32> to vector<8x128xf32>
    %108 = arith.addf %106, %107 : vector<8x128xf32>
    %cst_58 = arith.constant 0.000000e+00 : f32
    %109 = vector.broadcast %cst_58 : f32 to vector<8x128xf32>
    %110 = arith.maximumf %108, %109 : vector<8x128xf32>
    %111 = vector.extract_strided_slice %102 {offsets = [0, 128], sizes = [8, 128], strides = [1, 1]} : vector<8x256xf32> to vector<8x128xf32>
    %c416 = arith.constant 416 : index
    %c0_59 = arith.constant 0 : index
    %112 = vector.load %arg1[%c416, %c0_59] : memref<1120x128xf32, #tpu.memory_space<vmem>>, vector<128x128xf32>
    %c544 = arith.constant 544 : index
    %c0_60 = arith.constant 0 : index
    %113 = vector.load %arg1[%c544, %c0_60] : memref<1120x128xf32, #tpu.memory_space<vmem>>, vector<1x128xf32>
    %cst_61 = arith.constant dense<0.000000e+00> : vector<8x128xf32>
    %114 = tpu.matmul %111, %112, %cst_61 {dimension_numbers = #tpu.dot_dimension_numbers<[1], [0], [0], [1], [0, 0, 1, 1], [], []>} : vector<8x128xf32>, vector<128x128xf32>, vector<8x128xf32> -> vector<8x128xf32>
    %115 = vector.broadcast %113 : vector<1x128xf32> to vector<8x128xf32>
    %116 = arith.addf %114, %115 : vector<8x128xf32>
    %cst_62 = arith.constant 0.000000e+00 : f32
    %117 = vector.broadcast %cst_62 : f32 to vector<8x128xf32>
    %118 = arith.maximumf %116, %117 : vector<8x128xf32>
    %c808 = arith.constant 808 : index
    %c0_63 = arith.constant 0 : index
    %119 = vector.load %arg1[%c808, %c0_63] : memref<1120x128xf32, #tpu.memory_space<vmem>>, vector<1x2xf32>
    %c552 = arith.constant 552 : index
    %c0_64 = arith.constant 0 : index
    %120 = vector.load %arg1[%c552, %c0_64] : memref<1120x128xf32, #tpu.memory_space<vmem>>, vector<128x1xf32>
    %cst_65 = arith.constant dense<0.000000e+00> : vector<8x1xf32>
    %121 = tpu.matmul %110, %120, %cst_65 {dimension_numbers = #tpu.dot_dimension_numbers<[1], [0], [0], [1], [0, 0, 1, 1], [], []>} : vector<8x128xf32>, vector<128x1xf32>, vector<8x1xf32> -> vector<8x1xf32>
    %122 = vector.extract_strided_slice %119 {offsets = [0, 0], sizes = [1, 1], strides = [1, 1]} : vector<1x2xf32> to vector<1x1xf32>
    %123 = vector.broadcast %122 : vector<1x1xf32> to vector<8x1xf32>
    %124 = arith.addf %121, %123 : vector<8x1xf32>
    %c680 = arith.constant 680 : index
    %c0_66 = arith.constant 0 : index
    %125 = vector.load %arg1[%c680, %c0_66] : memref<1120x128xf32, #tpu.memory_space<vmem>>, vector<128x1xf32>
    %cst_67 = arith.constant dense<0.000000e+00> : vector<8x1xf32>
    %126 = tpu.matmul %118, %125, %cst_67 {dimension_numbers = #tpu.dot_dimension_numbers<[1], [0], [0], [1], [0, 0, 1, 1], [], []>} : vector<8x128xf32>, vector<128x1xf32>, vector<8x1xf32> -> vector<8x1xf32>
    %127 = vector.extract_strided_slice %119 {offsets = [0, 1], sizes = [1, 1], strides = [1, 1]} : vector<1x2xf32> to vector<1x1xf32>
    %128 = vector.broadcast %127 : vector<1x1xf32> to vector<8x1xf32>
    %129 = arith.addf %126, %128 : vector<8x1xf32>
    %130 = vector.extract_strided_slice %49 {offsets = [0, 0], sizes = [8, 4], strides = [1, 1]} : vector<8x8xf32> to vector<8x4xf32>
    %131 = vector.extract_strided_slice %49 {offsets = [0, 0], sizes = [8, 4], strides = [1, 1]} : vector<8x8xf32> to vector<8x4xf32>
    %132 = tpu.concatenate %130, %131 in 1 : vector<8x4xf32>, vector<8x4xf32> -> vector<8x8xf32>
    %133 = vector.extract_strided_slice %49 {offsets = [0, 4], sizes = [8, 4], strides = [1, 1]} : vector<8x8xf32> to vector<8x4xf32>
    %134 = vector.extract_strided_slice %49 {offsets = [0, 4], sizes = [8, 4], strides = [1, 1]} : vector<8x8xf32> to vector<8x4xf32>
    %135 = tpu.concatenate %133, %134 in 1 : vector<8x4xf32>, vector<8x4xf32> -> vector<8x8xf32>
    %cst_68 = arith.constant 0.000000e+00 : f32
    %136 = vector.broadcast %cst_68 : f32 to vector<8x1xf32>
    %cst_69 = arith.constant 0.000000e+00 : f32
    %137 = vector.broadcast %cst_69 : f32 to vector<8x1xf32>
    %c816 = arith.constant 816 : index
    %c0_70 = arith.constant 0 : index
    %138 = vector.load %arg1[%c816, %c0_70] : memref<1120x128xf32, #tpu.memory_space<vmem>>, vector<8x64xf32>
    %cst_71 = arith.constant dense<0.000000e+00> : vector<8x64xf32>
    %139 = tpu.matmul %132, %138, %cst_71 {dimension_numbers = #tpu.dot_dimension_numbers<[1], [0], [0], [1], [0, 0, 1, 1], [], []>} : vector<8x8xf32>, vector<8x64xf32>, vector<8x64xf32> -> vector<8x64xf32>
    %140 = vector.extract_strided_slice %99 {offsets = [0, 256], sizes = [8, 64], strides = [1, 1]} : vector<8x384xf32> to vector<8x64xf32>
    %141 = arith.addf %139, %140 : vector<8x64xf32>
    %cst_72 = arith.constant 0.000000e+00 : f32
    %142 = vector.broadcast %cst_72 : f32 to vector<8x64xf32>
    %143 = arith.maximumf %141, %142 : vector<8x64xf32>
    %c824 = arith.constant 824 : index
    %c0_73 = arith.constant 0 : index
    %144 = vector.load %arg1[%c824, %c0_73] : memref<1120x128xf32, #tpu.memory_space<vmem>>, vector<64x64xf32>
    %c888 = arith.constant 888 : index
    %c0_74 = arith.constant 0 : index
    %145 = vector.load %arg1[%c888, %c0_74] : memref<1120x128xf32, #tpu.memory_space<vmem>>, vector<1x64xf32>
    %cst_75 = arith.constant dense<0.000000e+00> : vector<8x64xf32>
    %146 = tpu.matmul %143, %144, %cst_75 {dimension_numbers = #tpu.dot_dimension_numbers<[1], [0], [0], [1], [0, 0, 1, 1], [], []>} : vector<8x64xf32>, vector<64x64xf32>, vector<8x64xf32> -> vector<8x64xf32>
    %147 = vector.broadcast %145 : vector<1x64xf32> to vector<8x64xf32>
    %148 = arith.addf %146, %147 : vector<8x64xf32>
    %cst_76 = arith.constant 0.000000e+00 : f32
    %149 = vector.broadcast %cst_76 : f32 to vector<8x64xf32>
    %150 = arith.maximumf %148, %149 : vector<8x64xf32>
    %c896 = arith.constant 896 : index
    %c0_77 = arith.constant 0 : index
    %151 = vector.load %arg1[%c896, %c0_77] : memref<1120x128xf32, #tpu.memory_space<vmem>>, vector<64x16xf32>
    %c960 = arith.constant 960 : index
    %c0_78 = arith.constant 0 : index
    %152 = vector.load %arg1[%c960, %c0_78] : memref<1120x128xf32, #tpu.memory_space<vmem>>, vector<1x16xf32>
    %cst_79 = arith.constant dense<0.000000e+00> : vector<8x16xf32>
    %153 = tpu.matmul %150, %151, %cst_79 {dimension_numbers = #tpu.dot_dimension_numbers<[1], [0], [0], [1], [0, 0, 1, 1], [], []>} : vector<8x64xf32>, vector<64x16xf32>, vector<8x16xf32> -> vector<8x16xf32>
    %154 = vector.broadcast %152 : vector<1x16xf32> to vector<8x16xf32>
    %155 = arith.addf %153, %154 : vector<8x16xf32>
    %156 = vector.extract_strided_slice %155 {offsets = [0, 0], sizes = [8, 8], strides = [1, 1]} : vector<8x16xf32> to vector<8x8xf32>
    %157 = vector.extract_strided_slice %155 {offsets = [0, 8], sizes = [8, 8], strides = [1, 1]} : vector<8x16xf32> to vector<8x8xf32>
    %158 = math.tanh %157 : vector<8x8xf32>
    %159 = math.exp %158 : vector<8x8xf32>
    %160 = arith.mulf %135, %159 : vector<8x8xf32>
    %161 = arith.addf %160, %156 : vector<8x8xf32>
    %162 = vector.extract_strided_slice %158 {offsets = [0, 0], sizes = [8, 4], strides = [1, 1]} : vector<8x8xf32> to vector<8x4xf32>
    %cst_80 = arith.constant dense<0.000000e+00> : vector<8xf32>
    %163 = vector.multi_reduction <add>, %162, %cst_80 [1] : vector<8x4xf32> to vector<8xf32>
    %164 = vector.shape_cast %163 : vector<8xf32> to vector<8x1xf32>
    %165 = arith.addf %136, %164 : vector<8x1xf32>
    %166 = vector.extract_strided_slice %158 {offsets = [0, 4], sizes = [8, 4], strides = [1, 1]} : vector<8x8xf32> to vector<8x4xf32>
    %cst_81 = arith.constant dense<0.000000e+00> : vector<8xf32>
    %167 = vector.multi_reduction <add>, %166, %cst_81 [1] : vector<8x4xf32> to vector<8xf32>
    %168 = vector.shape_cast %167 : vector<8xf32> to vector<8x1xf32>
    %169 = arith.addf %137, %168 : vector<8x1xf32>
    %c968 = arith.constant 968 : index
    %c0_82 = arith.constant 0 : index
    %170 = vector.load %arg1[%c968, %c0_82] : memref<1120x128xf32, #tpu.memory_space<vmem>>, vector<8x64xf32>
    %cst_83 = arith.constant dense<0.000000e+00> : vector<8x64xf32>
    %171 = tpu.matmul %161, %170, %cst_83 {dimension_numbers = #tpu.dot_dimension_numbers<[1], [0], [0], [1], [0, 0, 1, 1], [], []>} : vector<8x8xf32>, vector<8x64xf32>, vector<8x64xf32> -> vector<8x64xf32>
    %172 = vector.extract_strided_slice %99 {offsets = [0, 320], sizes = [8, 64], strides = [1, 1]} : vector<8x384xf32> to vector<8x64xf32>
    %173 = arith.addf %171, %172 : vector<8x64xf32>
    %cst_84 = arith.constant 0.000000e+00 : f32
    %174 = vector.broadcast %cst_84 : f32 to vector<8x64xf32>
    %175 = arith.maximumf %173, %174 : vector<8x64xf32>
    %c976 = arith.constant 976 : index
    %c0_85 = arith.constant 0 : index
    %176 = vector.load %arg1[%c976, %c0_85] : memref<1120x128xf32, #tpu.memory_space<vmem>>, vector<64x64xf32>
    %c1040 = arith.constant 1040 : index
    %c0_86 = arith.constant 0 : index
    %177 = vector.load %arg1[%c1040, %c0_86] : memref<1120x128xf32, #tpu.memory_space<vmem>>, vector<1x64xf32>
    %cst_87 = arith.constant dense<0.000000e+00> : vector<8x64xf32>
    %178 = tpu.matmul %175, %176, %cst_87 {dimension_numbers = #tpu.dot_dimension_numbers<[1], [0], [0], [1], [0, 0, 1, 1], [], []>} : vector<8x64xf32>, vector<64x64xf32>, vector<8x64xf32> -> vector<8x64xf32>
    %179 = vector.broadcast %177 : vector<1x64xf32> to vector<8x64xf32>
    %180 = arith.addf %178, %179 : vector<8x64xf32>
    %cst_88 = arith.constant 0.000000e+00 : f32
    %181 = vector.broadcast %cst_88 : f32 to vector<8x64xf32>
    %182 = arith.maximumf %180, %181 : vector<8x64xf32>
    %c1048 = arith.constant 1048 : index
    %c0_89 = arith.constant 0 : index
    %183 = vector.load %arg1[%c1048, %c0_89] : memref<1120x128xf32, #tpu.memory_space<vmem>>, vector<64x16xf32>
    %c1112 = arith.constant 1112 : index
    %c0_90 = arith.constant 0 : index
    %184 = vector.load %arg1[%c1112, %c0_90] : memref<1120x128xf32, #tpu.memory_space<vmem>>, vector<1x16xf32>
    %cst_91 = arith.constant dense<0.000000e+00> : vector<8x16xf32>
    %185 = tpu.matmul %182, %183, %cst_91 {dimension_numbers = #tpu.dot_dimension_numbers<[1], [0], [0], [1], [0, 0, 1, 1], [], []>} : vector<8x64xf32>, vector<64x16xf32>, vector<8x16xf32> -> vector<8x16xf32>
    %186 = vector.broadcast %184 : vector<1x16xf32> to vector<8x16xf32>
    %187 = arith.addf %185, %186 : vector<8x16xf32>
    %188 = vector.extract_strided_slice %187 {offsets = [0, 0], sizes = [8, 8], strides = [1, 1]} : vector<8x16xf32> to vector<8x8xf32>
    %189 = vector.extract_strided_slice %187 {offsets = [0, 8], sizes = [8, 8], strides = [1, 1]} : vector<8x16xf32> to vector<8x8xf32>
    %190 = math.tanh %189 : vector<8x8xf32>
    %191 = math.exp %190 : vector<8x8xf32>
    %192 = arith.mulf %132, %191 : vector<8x8xf32>
    %193 = arith.addf %192, %188 : vector<8x8xf32>
    %194 = vector.extract_strided_slice %190 {offsets = [0, 0], sizes = [8, 4], strides = [1, 1]} : vector<8x8xf32> to vector<8x4xf32>
    %cst_92 = arith.constant dense<0.000000e+00> : vector<8xf32>
    %195 = vector.multi_reduction <add>, %194, %cst_92 [1] : vector<8x4xf32> to vector<8xf32>
    %196 = vector.shape_cast %195 : vector<8xf32> to vector<8x1xf32>
    %197 = arith.addf %165, %196 : vector<8x1xf32>
    %198 = vector.extract_strided_slice %190 {offsets = [0, 4], sizes = [8, 4], strides = [1, 1]} : vector<8x8xf32> to vector<8x4xf32>
    %cst_93 = arith.constant dense<0.000000e+00> : vector<8xf32>
    %199 = vector.multi_reduction <add>, %198, %cst_93 [1] : vector<8x4xf32> to vector<8xf32>
    %200 = vector.shape_cast %199 : vector<8xf32> to vector<8x1xf32>
    %201 = arith.addf %169, %200 : vector<8x1xf32>
    %202 = vector.extract_strided_slice %193 {offsets = [0, 0], sizes = [8, 4], strides = [1, 1]} : vector<8x8xf32> to vector<8x4xf32>
    %203 = vector.extract_strided_slice %161 {offsets = [0, 0], sizes = [8, 4], strides = [1, 1]} : vector<8x8xf32> to vector<8x4xf32>
    %cst_94 = arith.constant -5.000000e-01 : f32
    %204 = vector.broadcast %cst_94 : f32 to vector<8x4xf32>
    %205 = arith.mulf %204, %202 : vector<8x4xf32>
    %206 = arith.mulf %205, %202 : vector<8x4xf32>
    %cst_95 = arith.constant dense<0.000000e+00> : vector<8xf32>
    %207 = vector.multi_reduction <add>, %206, %cst_95 [1] : vector<8x4xf32> to vector<8xf32>
    %208 = vector.shape_cast %207 : vector<8xf32> to vector<8x1xf32>
    %cst_96 = arith.constant -5.000000e-01 : f32
    %209 = vector.broadcast %cst_96 : f32 to vector<8x4xf32>
    %210 = arith.mulf %209, %203 : vector<8x4xf32>
    %211 = arith.mulf %210, %203 : vector<8x4xf32>
    %cst_97 = arith.constant dense<0.000000e+00> : vector<8xf32>
    %212 = vector.multi_reduction <add>, %211, %cst_97 [1] : vector<8x4xf32> to vector<8xf32>
    %213 = vector.shape_cast %212 : vector<8xf32> to vector<8x1xf32>
    %214 = arith.addf %208, %213 : vector<8x1xf32>
    %cst_98 = arith.constant 7.35150814 : f32
    %215 = vector.broadcast %cst_98 : f32 to vector<8x1xf32>
    %216 = arith.subf %214, %215 : vector<8x1xf32>
    %217 = vector.extract_strided_slice %193 {offsets = [0, 4], sizes = [8, 4], strides = [1, 1]} : vector<8x8xf32> to vector<8x4xf32>
    %218 = vector.extract_strided_slice %161 {offsets = [0, 4], sizes = [8, 4], strides = [1, 1]} : vector<8x8xf32> to vector<8x4xf32>
    %cst_99 = arith.constant -5.000000e-01 : f32
    %219 = vector.broadcast %cst_99 : f32 to vector<8x4xf32>
    %220 = arith.mulf %219, %217 : vector<8x4xf32>
    %221 = arith.mulf %220, %217 : vector<8x4xf32>
    %cst_100 = arith.constant dense<0.000000e+00> : vector<8xf32>
    %222 = vector.multi_reduction <add>, %221, %cst_100 [1] : vector<8x4xf32> to vector<8xf32>
    %223 = vector.shape_cast %222 : vector<8xf32> to vector<8x1xf32>
    %cst_101 = arith.constant -5.000000e-01 : f32
    %224 = vector.broadcast %cst_101 : f32 to vector<8x4xf32>
    %225 = arith.mulf %224, %218 : vector<8x4xf32>
    %226 = arith.mulf %225, %218 : vector<8x4xf32>
    %cst_102 = arith.constant dense<0.000000e+00> : vector<8xf32>
    %227 = vector.multi_reduction <add>, %226, %cst_102 [1] : vector<8x4xf32> to vector<8xf32>
    %228 = vector.shape_cast %227 : vector<8xf32> to vector<8x1xf32>
    %229 = arith.addf %223, %228 : vector<8x1xf32>
    %cst_103 = arith.constant 7.35150814 : f32
    %230 = vector.broadcast %cst_103 : f32 to vector<8x1xf32>
    %231 = arith.subf %229, %230 : vector<8x1xf32>
    %232 = arith.subf %124, %4 : vector<8x1xf32>
    %233 = math.absf %232 : vector<8x1xf32>
    %cst_104 = arith.constant 1.000000e+00 : f32
    %234 = vector.broadcast %cst_104 : f32 to vector<8x1xf32>
    %235 = arith.cmpf olt, %233, %234 : vector<8x1xf32>
    %cst_105 = arith.constant 5.000000e-01 : f32
    %236 = vector.broadcast %cst_105 : f32 to vector<8x1xf32>
    %237 = arith.mulf %236, %232 : vector<8x1xf32>
    %238 = arith.mulf %237, %232 : vector<8x1xf32>
    %cst_106 = arith.constant 5.000000e-01 : f32
    %239 = vector.broadcast %cst_106 : f32 to vector<8x1xf32>
    %240 = arith.subf %233, %239 : vector<8x1xf32>
    %241 = arith.select %235, %238, %240 : vector<8x1xi1>, vector<8x1xf32>
    %242 = vector.shape_cast %241 : vector<8x1xf32> to vector<1x8x1xf32>
    %cst_107 = arith.constant dense<0.000000e+00> : vector<1xf32>
    %243 = vector.multi_reduction <add>, %242, %cst_107 [1, 2] : vector<1x8x1xf32> to vector<1xf32>
    %244 = vector.shape_cast %243 : vector<1xf32> to vector<1x1x1xf32>
    %245 = vector.extract %244[0, 0, 0] : f32 from vector<1x1x1xf32>
    %246 = vector.broadcast %245 : f32 to vector<1x1xf32>
    %cst_108 = arith.constant 0.000000e+00 : f32
    %247 = vector.broadcast %cst_108 : f32 to vector<8x1xf32>
    %248 = arith.maximumf %129, %247 : vector<8x1xf32>
    %249 = arith.mulf %129, %5 : vector<8x1xf32>
    %250 = arith.subf %248, %249 : vector<8x1xf32>
    %251 = math.absf %129 : vector<8x1xf32>
    %cst_109 = arith.constant 0.000000e+00 : f32
    %252 = vector.broadcast %cst_109 : f32 to vector<8x1xf32>
    %253 = arith.subf %252, %251 : vector<8x1xf32>
    %254 = math.exp %253 : vector<8x1xf32>
    %cst_110 = arith.constant 1.000000e+00 : f32
    %255 = vector.broadcast %cst_110 : f32 to vector<8x1xf32>
    %256 = arith.addf %255, %254 : vector<8x1xf32>
    %257 = math.log %256 : vector<8x1xf32>
    %258 = arith.addf %250, %257 : vector<8x1xf32>
    %259 = vector.shape_cast %258 : vector<8x1xf32> to vector<1x8x1xf32>
    %cst_111 = arith.constant dense<0.000000e+00> : vector<1xf32>
    %260 = vector.multi_reduction <add>, %259, %cst_111 [1, 2] : vector<1x8x1xf32> to vector<1xf32>
    %261 = vector.shape_cast %260 : vector<1xf32> to vector<1x1x1xf32>
    %262 = vector.extract %261[0, 0, 0] : f32 from vector<1x1x1xf32>
    %263 = vector.broadcast %262 : f32 to vector<1x1xf32>
    %264 = arith.mulf %48, %48 : vector<8x8xf32>
    %cst_112 = arith.constant dense<0.000000e+00> : vector<8xf32>
    %265 = vector.multi_reduction <add>, %264, %cst_112 [0] : vector<8x8xf32> to vector<8xf32>
    %266 = vector.shape_cast %265 : vector<8xf32> to vector<1x8xf32>
    %cst_113 = arith.constant 8.000000e+00 : f32
    %267 = vector.broadcast %cst_113 : f32 to vector<1x8xf32>
    %268 = arith.divf %266, %267 : vector<1x8xf32>
    %269 = math.log %268 : vector<1x8xf32>
    %270 = arith.subf %268, %269 : vector<1x8xf32>
    %cst_114 = arith.constant dense<0.000000e+00> : vector<1xf32>
    %271 = vector.multi_reduction <add>, %270, %cst_114 [1] : vector<1x8xf32> to vector<1xf32>
    %272 = vector.shape_cast %271 : vector<1xf32> to vector<1x1xf32>
    %273 = arith.subf %2, %91 : vector<8x16xf32>
    %274 = arith.mulf %273, %273 : vector<8x16xf32>
    %cst_115 = arith.constant dense<0.000000e+00> : vector<8xf32>
    %275 = vector.multi_reduction <add>, %274, %cst_115 [1] : vector<8x16xf32> to vector<8xf32>
    %276 = vector.shape_cast %275 : vector<8xf32> to vector<8x1xf32>
    %cst_116 = arith.constant dense<0.000000e+00> : vector<1xf32>
    %277 = vector.multi_reduction <add>, %276, %cst_116 [0] : vector<8x1xf32> to vector<1xf32>
    %278 = vector.shape_cast %277 : vector<1xf32> to vector<1x1xf32>
    %cst_117 = arith.constant 8.000000e+00 : f32
    %279 = vector.broadcast %cst_117 : f32 to vector<1x1xf32>
    %280 = arith.divf %278, %279 : vector<1x1xf32>
    %cst_118 = arith.constant dense<0.000000e+00> : vector<1xf32>
    %281 = vector.multi_reduction <add>, %216, %cst_118 [0] : vector<8x1xf32> to vector<1xf32>
    %282 = vector.shape_cast %281 : vector<1xf32> to vector<1x1xf32>
    %cst_119 = arith.constant 8.000000e+00 : f32
    %283 = vector.broadcast %cst_119 : f32 to vector<1x1xf32>
    %284 = arith.divf %282, %283 : vector<1x1xf32>
    %cst_120 = arith.constant dense<0.000000e+00> : vector<1xf32>
    %285 = vector.multi_reduction <add>, %231, %cst_120 [0] : vector<8x1xf32> to vector<1xf32>
    %286 = vector.shape_cast %285 : vector<1xf32> to vector<1x1xf32>
    %cst_121 = arith.constant 8.000000e+00 : f32
    %287 = vector.broadcast %cst_121 : f32 to vector<1x1xf32>
    %288 = arith.divf %286, %287 : vector<1x1xf32>
    %cst_122 = arith.constant dense<0.000000e+00> : vector<1xf32>
    %289 = vector.multi_reduction <add>, %197, %cst_122 [0] : vector<8x1xf32> to vector<1xf32>
    %290 = vector.shape_cast %289 : vector<1xf32> to vector<1x1xf32>
    %cst_123 = arith.constant 8.000000e+00 : f32
    %291 = vector.broadcast %cst_123 : f32 to vector<1x1xf32>
    %292 = arith.divf %290, %291 : vector<1x1xf32>
    %cst_124 = arith.constant dense<0.000000e+00> : vector<1xf32>
    %293 = vector.multi_reduction <add>, %201, %cst_124 [0] : vector<8x1xf32> to vector<1xf32>
    %294 = vector.shape_cast %293 : vector<1xf32> to vector<1x1xf32>
    %cst_125 = arith.constant 8.000000e+00 : f32
    %295 = vector.broadcast %cst_125 : f32 to vector<1x1xf32>
    %296 = arith.divf %294, %295 : vector<1x1xf32>
    %297 = arith.addf %288, %296 : vector<1x1xf32>
    %298 = arith.addf %284, %292 : vector<1x1xf32>
    %299 = arith.subf %297, %298 : vector<1x1xf32>
    %cst_126 = arith.constant 0.000000e+00 : f32
    %300 = vector.broadcast %cst_126 : f32 to vector<1x1xf32>
    %301 = arith.subf %300, %284 : vector<1x1xf32>
    %302 = arith.subf %301, %288 : vector<1x1xf32>
    %303 = arith.subf %302, %292 : vector<1x1xf32>
    %304 = arith.subf %303, %296 : vector<1x1xf32>
    %cst_127 = arith.constant 0.00999999977 : f32
    %305 = vector.broadcast %cst_127 : f32 to vector<1x1xf32>
    %306 = arith.mulf %305, %272 : vector<1x1xf32>
    %307 = arith.addf %306, %280 : vector<1x1xf32>
    %308 = arith.addf %307, %246 : vector<1x1xf32>
    %309 = arith.addf %308, %263 : vector<1x1xf32>
    %310 = arith.addf %309, %304 : vector<1x1xf32>
    %cst_128 = arith.constant 1.000000e-01 : f32
    %311 = vector.broadcast %cst_128 : f32 to vector<1x1xf32>
    %312 = arith.mulf %311, %299 : vector<1x1xf32>
    %313 = arith.addf %310, %312 : vector<1x1xf32>
    %cst_129 = arith.constant 0.000000e+00 : f32
    %314 = vector.broadcast %cst_129 : f32 to vector<8x120xf32>
    %315 = tpu.concatenate %48, %314 in 1 : vector<8x8xf32>, vector<8x120xf32> -> vector<8x128xf32>
    %316 = tpu.iota {dimensions = array<i32: 1>} : vector<8x128xi32>
    %c0_i32 = arith.constant 0 : i32
    %317 = vector.broadcast %c0_i32 : i32 to vector<8x128xi32>
    %318 = arith.cmpi eq, %316, %317 : vector<8x128xi32>
    %cst_130 = arith.constant 0.000000e+00 : f32
    %319 = vector.shape_cast %313 : vector<1x1xf32> to vector<1x1xf32>
    %320 = vector.broadcast %319 : vector<1x1xf32> to vector<8x128xf32>
    %321 = vector.broadcast %cst_130 : f32 to vector<8x128xf32>
    %322 = arith.select %318, %320, %321 : vector<8x128xi1>, vector<8x128xf32>
    %c1_i32 = arith.constant 1 : i32
    %323 = vector.broadcast %c1_i32 : i32 to vector<8x128xi32>
    %324 = arith.cmpi eq, %316, %323 : vector<8x128xi32>
    %cst_131 = arith.constant 0.000000e+00 : f32
    %325 = vector.shape_cast %272 : vector<1x1xf32> to vector<1x1xf32>
    %326 = vector.broadcast %325 : vector<1x1xf32> to vector<8x128xf32>
    %327 = vector.broadcast %cst_131 : f32 to vector<8x128xf32>
    %328 = arith.select %324, %326, %327 : vector<8x128xi1>, vector<8x128xf32>
    %c2_i32 = arith.constant 2 : i32
    %329 = vector.broadcast %c2_i32 : i32 to vector<8x128xi32>
    %330 = arith.cmpi eq, %316, %329 : vector<8x128xi32>
    %cst_132 = arith.constant 0.000000e+00 : f32
    %331 = vector.shape_cast %280 : vector<1x1xf32> to vector<1x1xf32>
    %332 = vector.broadcast %331 : vector<1x1xf32> to vector<8x128xf32>
    %333 = vector.broadcast %cst_132 : f32 to vector<8x128xf32>
    %334 = arith.select %330, %332, %333 : vector<8x128xi1>, vector<8x128xf32>
    %c3_i32 = arith.constant 3 : i32
    %335 = vector.broadcast %c3_i32 : i32 to vector<8x128xi32>
    %336 = arith.cmpi eq, %316, %335 : vector<8x128xi32>
    %cst_133 = arith.constant 0.000000e+00 : f32
    %337 = vector.shape_cast %263 : vector<1x1xf32> to vector<1x1xf32>
    %338 = vector.broadcast %337 : vector<1x1xf32> to vector<8x128xf32>
    %339 = vector.broadcast %cst_133 : f32 to vector<8x128xf32>
    %340 = arith.select %336, %338, %339 : vector<8x128xi1>, vector<8x128xf32>
    %c4_i32 = arith.constant 4 : i32
    %341 = vector.broadcast %c4_i32 : i32 to vector<8x128xi32>
    %342 = arith.cmpi eq, %316, %341 : vector<8x128xi32>
    %cst_134 = arith.constant 0.000000e+00 : f32
    %343 = vector.shape_cast %246 : vector<1x1xf32> to vector<1x1xf32>
    %344 = vector.broadcast %343 : vector<1x1xf32> to vector<8x128xf32>
    %345 = vector.broadcast %cst_134 : f32 to vector<8x128xf32>
    %346 = arith.select %342, %344, %345 : vector<8x128xi1>, vector<8x128xf32>
    %c5_i32 = arith.constant 5 : i32
    %347 = vector.broadcast %c5_i32 : i32 to vector<8x128xi32>
    %348 = arith.cmpi eq, %316, %347 : vector<8x128xi32>
    %cst_135 = arith.constant 0.000000e+00 : f32
    %349 = vector.shape_cast %299 : vector<1x1xf32> to vector<1x1xf32>
    %350 = vector.broadcast %349 : vector<1x1xf32> to vector<8x128xf32>
    %351 = vector.broadcast %cst_135 : f32 to vector<8x128xf32>
    %352 = arith.select %348, %350, %351 : vector<8x128xi1>, vector<8x128xf32>
    %c6_i32 = arith.constant 6 : i32
    %353 = vector.broadcast %c6_i32 : i32 to vector<8x128xi32>
    %354 = arith.cmpi eq, %316, %353 : vector<8x128xi32>
    %cst_136 = arith.constant 0.000000e+00 : f32
    %355 = vector.shape_cast %284 : vector<1x1xf32> to vector<1x1xf32>
    %356 = vector.broadcast %355 : vector<1x1xf32> to vector<8x128xf32>
    %357 = vector.broadcast %cst_136 : f32 to vector<8x128xf32>
    %358 = arith.select %354, %356, %357 : vector<8x128xi1>, vector<8x128xf32>
    %c7_i32 = arith.constant 7 : i32
    %359 = vector.broadcast %c7_i32 : i32 to vector<8x128xi32>
    %360 = arith.cmpi eq, %316, %359 : vector<8x128xi32>
    %cst_137 = arith.constant 0.000000e+00 : f32
    %361 = vector.shape_cast %288 : vector<1x1xf32> to vector<1x1xf32>
    %362 = vector.broadcast %361 : vector<1x1xf32> to vector<8x128xf32>
    %363 = vector.broadcast %cst_137 : f32 to vector<8x128xf32>
    %364 = arith.select %360, %362, %363 : vector<8x128xi1>, vector<8x128xf32>
    %c8_i32 = arith.constant 8 : i32
    %365 = vector.broadcast %c8_i32 : i32 to vector<8x128xi32>
    %366 = arith.cmpi eq, %316, %365 : vector<8x128xi32>
    %cst_138 = arith.constant 0.000000e+00 : f32
    %367 = vector.shape_cast %292 : vector<1x1xf32> to vector<1x1xf32>
    %368 = vector.broadcast %367 : vector<1x1xf32> to vector<8x128xf32>
    %369 = vector.broadcast %cst_138 : f32 to vector<8x128xf32>
    %370 = arith.select %366, %368, %369 : vector<8x128xi1>, vector<8x128xf32>
    %c9_i32 = arith.constant 9 : i32
    %371 = vector.broadcast %c9_i32 : i32 to vector<8x128xi32>
    %372 = arith.cmpi eq, %316, %371 : vector<8x128xi32>
    %cst_139 = arith.constant 0.000000e+00 : f32
    %373 = vector.shape_cast %296 : vector<1x1xf32> to vector<1x1xf32>
    %374 = vector.broadcast %373 : vector<1x1xf32> to vector<8x128xf32>
    %375 = vector.broadcast %cst_139 : f32 to vector<8x128xf32>
    %376 = arith.select %372, %374, %375 : vector<8x128xi1>, vector<8x128xf32>
    %377 = arith.addf %322, %328 : vector<8x128xf32>
    %378 = arith.addf %334, %340 : vector<8x128xf32>
    %379 = arith.addf %346, %352 : vector<8x128xf32>
    %380 = arith.addf %358, %364 : vector<8x128xf32>
    %381 = arith.addf %370, %376 : vector<8x128xf32>
    %382 = arith.addf %377, %378 : vector<8x128xf32>
    %383 = arith.addf %379, %380 : vector<8x128xf32>
    %384 = arith.addf %382, %383 : vector<8x128xf32>
    %385 = arith.addf %384, %381 : vector<8x128xf32>
    %c0_140 = arith.constant 0 : index
    %c0_141 = arith.constant 0 : index
    %386 = vector.load %arg3[%c0_140, %c0_141] : memref<16x128xf32, #tpu.memory_space<vmem>>, vector<8x128xf32>
    tpu.vector_store %arg3[%c0_140, %c0_141], %315 {strides = array<i32>} : memref<16x128xf32, #tpu.memory_space<vmem>>, vector<8x128xf32>,
    %c8_142 = arith.constant 8 : index
    %c0_143 = arith.constant 0 : index
    %387 = vector.load %arg3[%c8_142, %c0_143] : memref<16x128xf32, #tpu.memory_space<vmem>>, vector<8x128xf32>
    tpu.vector_store %arg3[%c8_142, %c0_143], %385 {strides = array<i32>} : memref<16x128xf32, #tpu.memory_space<vmem>>, vector<8x128xf32>,
    return
  }
}

</mosaic_0001>

<bundles_post_ra>
// kernel: flow_world_model_forward.1
= control target key start
LH: loop header
LB: loop body
LE: loop exit
PB: predicated region body
PF: predicated region fallthrough
CT: control target
= control target key end

     0   :  { %8 = vsyncpa [#allocation3], 0  ;;  %s3261_s12 = smov [#allocation2]   ;;  %s3569_s0 = inlined_call_operand.vmem [shape: f32[16,128], index: 0, kind: input, shape index: {}]   ;;  %s3570_s1 = inlined_call_operand.hbm [shape: f32[1120,128], index: 1, kind: input, shape index: {}]   ;;  %s3571_s2 = inlined_call_operand.vmem [shape: f32[24,384], index: 2, kind: input, shape index: {}]   ;;  %s3572_s3 = inlined_call_operand.vmem [shape: f32[16,128], index: 3, kind: output, shape index: {}]  }
   0x1   :  { %s16_s13 = sshll.u32 %s3261_s12, 4  ;;  %s3237_s16 = scalar_lea.hbm %s3570_s1, 17920  ;;  %s17_s13 = int_to_ptr.vmem [resolvable:$true] %s16_s13 }
   0x2   :  { %p3238_p0 = scmp.ne.s32.totalorder %s3570_s1, %s3237_s16  ;;  %p3241_p1 = scmp.lt.u32.totalorder %s3237_s16, %s3570_s1 }
   0x4   :  { %p3243_p2 = pnand %p3241_p1, %p3238_p0 }
   0x6   :  { %3246 = shalt.err (!%p3243_p2)
}
   0x7   :  { %s3247_s21 = scalar_lea.vmem %s17_s13, 17920  ;;  %p3252_p4 = scmp.lt.s32.totalorder %s17_s13, %s17_s13 }
   0x8   :  { %p3248_p3 = scmp.ne.s32.totalorder %s17_s13, %s3247_s21  ;;  %p3253_p5 = scmp.lt.s32.totalorder %s3247_s21, %s3247_s21 }
   0xa   :  { %p3254_p6 = por %p3253_p5, %p3252_p4 }
   0xc   :  { %p3255_p7 = pnand %p3254_p6, %p3248_p3 }
   0xe   :  { %3258 = shalt.err (!%p3255_p7)
}
   0xf   :  { %s3262_s22 = smov 128   ;;  %s3263_s23 = smov 8  }
  0x10   :  { %22 = dma.hbm_to_vmem [thread:$0]  %s3570_s1, 17920, %s17_s13, [#allocation3], %s3262_s22, %s3262_s22, %s3263_s23  }
  0x11   :  { %3259 = dma.done.wait [#allocation3], 17920  }
  0x12   :  { %3260 = vsyncadd [#allocation3], 4294949376  ;;  %vm37_vm0 = vcmask 130048   ;;  %v30_v0 = vld [vmem:[#allocation2] sm:$0xff]  ;;  %v31_v1 = vld [vmem:[#allocation2 + $0x8] sm:$0xff]  ;;  %s3264_s1 = smov 112  }
  0x13   :  { %v3311_v2 = vld [vmem:[%s3569_s0] sm:$0xff]  ;;  %v3018_v3 = vpack.c.bf16 %v31_v1, %v30_v0  ;;  %v29_v4 = vld [vmem:[%s3569_s0 + $0x8] sm:$0xff]  ;;  %v121_v5 = vld [vmem:[#allocation2 + $0x18] sm:$0xff]  ;;  %v3265_v50 = vmov 0.0   ;;  %vm3266_vm1 = vmmov 0   ;;  %vm579_vm2 = vcmask 64512  }
  0x14   :  { %2704 = vmatprep.mubr.msk.f32.mxu0 %vm37_vm0, %v3311_v2  ;;  %v122_v6 = vld [vmem:[#allocation2 + $0x20] sm:$0xff]  ;;  %v2493_v8 = vld [vmem:[#allocation2 + $0x10] ss:$0 sm:$0xff]  ;;  %v212_v16 = vld [vmem:[#allocation2 + $0x38] sm:$0xff]  ;;  %1066 = vrot.lane.b32.xlu0 %v3311_v2, %s3264_s1  ;;  %s3267_s30 = smov 124   ;;  %s3268_s4 = smov 4  }
  0x15   :  { %3019 = vmatprep.subr.bf16.mxu0 %v3018_v3  ;;  %v3022_v7 = vpack.c.bf16 %v122_v6, %v121_v5  ;;  %v211_v15 = vld [vmem:[#allocation2 + $0x30] sm:$0xff]  ;;  %v2496_v18 = vld [vmem:[#allocation2 + $0x28] ss:$0 sm:$0xff]  ;;  %v2499_v28 = vld [vmem:[#allocation2 + $0x40] ss:$0 sm:$0xff]  ;;  %vm1071_vm3 = vcmask 1043456  }
  0x16   :  { %3021 = vmatpush3.bf16.msra.mxu0 %v3018_v3  ;;  %v3026_v17 = vpack.c.bf16 %v212_v16, %v211_v15  ;;  %v303_v25 = vld [vmem:[#allocation2 + $0x48] sm:$0xff]  ;;  %v304_v26 = vld [vmem:[#allocation2 + $0x50] sm:$0xff]  ;;  %v393_v37 = vld [vmem:[#allocation2 + $0x60] sm:$0xff]  ;;  %vm1068_vm4 = vcmask 31744   ;;  %vm1848_vm5 = vcmask 523264   ;;  %s3271_s21 = smov 120  }
  0x17   :  { %3023 = vmatprep.subr.bf16.mxu1 %v3022_v7  ;;  %v3030_v27 = vpack.c.bf16 %v304_v26, %v303_v25  ;;  %v394_v38 = vld [vmem:[#allocation2 + $0x68] sm:$0xff]  ;;  %v2502_v40 = vld [vmem:[#allocation2 + $0x58] ss:$0 sm:$0xff]  ;;  %v486_v48 = vld [vmem:[#allocation2 + $0x80] sm:$0xff]  ;;  %s3272_s22 = smov 127   ;;  %s3273_s23 = smov 108  }
  0x18   :  { %3025 = vmatpush3.bf16.msra.mxu1 %v3022_v7  ;;  %3027 = vmatprep.subr.bf16.mxu0 %v3026_v17  ;;  %v3034_v39 = vpack.c.bf16 %v394_v38, %v393_v37  ;;  %v485_v47 = vld [vmem:[#allocation2 + $0x78] sm:$0xff]  ;;  %v2505_v51 = vld [vmem:[#allocation2 + $0x70] ss:$0 sm:$0xff]  ;;  %v2508_v61 = vld [vmem:[#allocation2 + $0x88] ss:$0 sm:$0xff]  ;;  %v3269_v7 = vmov 0.0|0.0  }
  0x19   :  { %2705 = vmatmul.mubr.msk.f32.vlgmr.msra.gmra.mrb[0].mxu0 %vm37_vm0, %v29_v4  ;;  %3031 = vmatprep.subr.bf16.mxu1 %v3030_v27  ;;  %v3038_v49 = vpack.c.bf16 %v486_v48, %v485_v47  ;;  %v573_v60 = vld [vmem:[#allocation2 + $0x90] sm:$0xff]  ;;  %v654_v4 = vld [vmem:[#allocation2 + $0xa0] sm:$0xff]  ;;  %v655_v5 = vld [vmem:[#allocation2 + $0xa8] sm:$0xff]  ;;  %s3274_s24 = smov 116   ;;  %vm2347_vm7 = vcmask 7168   ;;  %s3275_s27 = smov 107  }
  0x1a   :  { %3029 = vmatpush3.bf16.msra.mxu0 %v3026_v17  ;;  %v3043_v6 = vpack.c.bf16 %v655_v5, %v654_v4  ;;  %v2513_v16 = vld [vmem:[#allocation2 + $0xb0] ss:$0 sm:$0xff]  ;;  %v1398_v4 = vld [vmem:[#allocation2 + $0x178] sm:$0xff]  ;;  %v1399_v5 = vld [vmem:[#allocation2 + $0x180] sm:$0xff] }
  0x1b   :  { %3035 = vmatprep.subr.bf16.mxu0 %v3034_v39  ;;  %v1389_v47 = vld [vmem:[#allocation2 + $0x130] sm:$0xff] }
  0xec   :  { %v2706_v9 = vpop.f32.mrb[0].mxu0 }
  0xed   :  { %v116_v10 = vadd.f32 %v2706_v9, %v2493_v8  ;;  %v110_v11 = vpop.f32.mrb[1].mxu0 }
  0xee   :  { %v111_v12 = vadd.f32 %v2493_v8, %v110_v11  ;;  %v2511_v8 = vld [vmem:[#allocation2 + $0x98] ss:$0 sm:$0xff] }
  0xef   :  { %v120_v14 = vmax.f32 %v116_v10, 0.0 }
  0xf0   :  { %v119_v13 = vmax.f32 %v111_v12, 0.0 }
  0xf2   :  { %2711 = vmatprep.mubr.msk.f32.mxu1 %vm37_vm0, %v119_v13 }
  0xf3   :  { %2712 = vmatmul.mubr.msk.f32.vlgmr.msra.gmra.mrb[0].mxu1 %vm37_vm0, %v120_v14 }
  0xf4   :  { %3033 = vmatpush3.bf16.msra.mxu1 %v3030_v27 }
  0xf5   :  { %3039 = vmatprep.subr.bf16.mxu1 %v3038_v49 }
 0x1c6   :  { %v2713_v19 = vpop.f32.mrb[0].mxu1 }
 0x1c7   :  { %v206_v20 = vadd.f32 %v2713_v19, %v2496_v18  ;;  %v200_v21 = vpop.f32.mrb[1].mxu1 }
 0x1c8   :  { %v201_v22 = vadd.f32 %v2496_v18, %v200_v21  ;;  %v817_v21 = vld [vmem:[#allocation2 + $0xd0] sm:$0xff] }
 0x1c9   :  { %v210_v24 = vmax.f32 %v206_v20, 0.0 }
 0x1ca   :  { %v209_v23 = vmax.f32 %v201_v22, 0.0  ;;  %v818_v22 = vld [vmem:[#allocation2 + $0xd8] sm:$0xff] }
 0x1cc   :  { %2718 = vmatprep.mubr.msk.f32.mxu0 %vm37_vm0, %v209_v23  ;;  %v3049_v23 = vpack.c.bf16 %v818_v22, %v817_v21  ;;  %v3417_v21 = vld [vmem:[%s3571_s2 + $0x30] ss:$8 sm:$0x7] }
 0x1cd   :  { %2719 = vmatmul.mubr.msk.f32.vlgmr.msra.gmra.mrb[2].mxu0 %vm37_vm0, %v210_v24  ;;  %v2515_v24 = vld [vmem:[#allocation2 + $0xc8] ss:$0 sm:$0xff] }
 0x1ce   :  { %3037 = vmatpush3.bf16.msra.mxu0 %v3034_v39  ;;  %v1063_v39 = vld [vmem:[%s3571_s2 + $0x18] sm:$0xf] }
 0x1cf   :  { %2742 = vmatprep.subr.mxu0 %v3265_v50 }
 0x2a0   :  { %v2720_v29 = vpop.f32.mrb[2].mxu0 }
 0x2a1   :  { %v296_v30 = vadd.f32 %v2720_v29, %v2499_v28  ;;  %v290_v31 = vpop.f32.mrb[3].mxu0 }
 0x2a2   :  { %v291_v32 = vadd.f32 %v2499_v28, %v290_v31  ;;  %v899_v31 = vld [vmem:[#allocation2 + $0xf0] sm:$0xff] }
 0x2a3   :  { %v300_v33 = vadd.f32 %v296_v30, %v120_v14  ;;  %v736_v14 = vld [vmem:[#allocation2 + $0xc0] sm:$0xff]  ;;  %v898_v30 = vld [vmem:[#allocation2 + $0xe8] sm:$0xff] }
 0x2a4   :  { %v299_v34 = vadd.f32 %v291_v32, %v119_v13  ;;  %v735_v13 = vld [vmem:[#allocation2 + $0xb8] sm:$0xff]  ;;  %v3052_v32 = vpack.c.bf16 %v899_v31, %v898_v30 }
 0x2a5   :  { %v302_v36 = vmax.f32 %v300_v33, 0.0  ;;  %v3046_v15 = vpack.c.bf16 %v736_v14, %v735_v13  ;;  %v1064_v33 = vld [vmem:[%s3571_s2 + $0x20] sm:$0xf] }
 0x2a6   :  { %v301_v35 = vmax.f32 %v299_v34, 0.0  ;;  %v2517_v34 = vld [vmem:[#allocation2 + $0xe0] ss:$0 sm:$0xff] }
 0x2a8   :  { %2725 = vmatprep.mubr.msk.f32.mxu1 %vm37_vm0, %v301_v35 }
 0x2a9   :  { %2726 = vmatmul.mubr.msk.f32.vlgmr.msra.gmra.mrb[2].mxu1 %vm37_vm0, %v302_v36 }
 0x2aa   :  { %3041 = vmatpush3.bf16.msra.mxu1 %v3038_v49  ;;  %v1390_v49 = vld [vmem:[#allocation2 + $0x138] sm:$0xff] }
 0x2ab   :  { %3042 = vmatprep.subr.bf16.mxu1 %v3269_v7 }
 0x37c   :  { %v2727_v41 = vpop.f32.mrb[2].mxu1 }
 0x37d   :  { %v388_v42 = vadd.f32 %v2727_v41, %v2502_v40  ;;  %v382_v43 = vpop.f32.mrb[3].mxu1  ;;  %v1060_v41 = vld [vmem:[%s3571_s2] sm:$0xff] }
 0x37e   :  { %v383_v44 = vadd.f32 %v2502_v40, %v382_v43  ;;  %v1061_v40 = vld [vmem:[%s3571_s2 + $0x8] sm:$0xff]  ;;  %v1386_v43 = vld [vmem:[#allocation2 + $0x118] sm:$0xff] }
 0x37f   :  { %v392_v46 = vmax.f32 %v388_v42, 0.0  ;;  %v3386_v42 = vpop.permute.xlu0 %1066 }
 0x380   :  { %v391_v45 = vmax.f32 %v383_v44, 0.0  ;;  %v1387_v44 = vld [vmem:[#allocation2 + $0x120] sm:$0xff] }
 0x382   :  { %2732 = vmatprep.mubr.msk.f32.mxu0 %vm37_vm0, %v391_v45  ;;  %v3058_v45 = vpack.c.bf16 %v1387_v44, %v1386_v43  ;;  %v1576_v43 = vld [vmem:[#allocation2 + $0x250] sm:$0xff] }
 0x383   :  { %2733 = vmatmul.mubr.msk.f32.vlgmr.msra.gmra.mrb[4].mxu0 %vm37_vm0, %v392_v46  ;;  %v1388_v46 = vld [vmem:[#allocation2 + $0x128] sm:$0xff] }
 0x384   :  { %2743 = vmatpush3.msra.mxu0 %v573_v60  ;;  %2744 = vmatprep.mubr.msk.f32.mxu0 %vm3266_vm1, %v3265_v50  ;;  %v3061_v48 = vpack.c.bf16 %v1389_v47, %v1388_v46  ;;  %v981_v60 = vld [vmem:[#allocation2 + $0x108] sm:$0xff]  ;;  %v1485_v46 = vld [vmem:[#allocation2 + $0x1d8] sm:$0xff] }
 0x385   :  { %3045 = vmatprep.subr.bf16.mxu0 %v3269_v7 }
 0x456   :  { %v2734_v52 = vpop.f32.mrb[4].mxu0 }
 0x457   :  { %v478_v53 = vadd.f32 %v2734_v52, %v2505_v51  ;;  %v472_v54 = vpop.f32.mrb[5].mxu0 }
 0x458   :  { %v473_v55 = vadd.f32 %v2505_v51, %v472_v54  ;;  %v1391_v51 = vld [vmem:[#allocation2 + $0x140] sm:$0xff]  ;;  %v1393_v54 = vld [vmem:[#allocation2 + $0x150] sm:$0xff] }
 0x459   :  { %v482_v56 = vadd.f32 %v478_v53, %v302_v36  ;;  %v3064_v52 = vpack.c.bf16 %v1391_v51, %v1390_v49  ;;  %v1392_v53 = vld [vmem:[#allocation2 + $0x148] sm:$0xff]  ;;  %v1578_v49 = vld [vmem:[#allocation2 + $0x260] sm:$0xff] }
 0x45a   :  { %v481_v57 = vadd.f32 %v473_v55, %v301_v35  ;;  %v3067_v55 = vpack.c.bf16 %v1393_v54, %v1392_v53  ;;  %v1487_v53 = vld [vmem:[#allocation2 + $0x1e8] sm:$0xff] }
 0x45b   :  { %v484_v59 = vmax.f32 %v482_v56, 0.0  ;;  %v1394_v56 = vld [vmem:[#allocation2 + $0x158] sm:$0xff] }
 0x45c   :  { %v483_v58 = vmax.f32 %v481_v57, 0.0  ;;  %v1395_v57 = vld [vmem:[#allocation2 + $0x160] sm:$0xff] }
 0x45e   :  { %2739 = vmatprep.mubr.msk.f32.mxu1 %vm37_vm0, %v483_v58  ;;  %v3070_v58 = vpack.c.bf16 %v1395_v57, %v1394_v56  ;;  %v1580_v56 = vld [vmem:[#allocation2 + $0x270] sm:$0xff] }
 0x45f   :  { %2740 = vmatmul.mubr.msk.f32.vlgmr.msra.gmra.mrb[4].mxu1 %vm37_vm0, %v484_v59  ;;  %v980_v59 = vld [vmem:[#allocation2 + $0x100] sm:$0xff] }
 0x460   :  { %2751 = vmatprep.mubr.msk.f32.mxu1 %vm3266_vm1, %v3265_v50  ;;  %3044 = vmatpush3.bf16.msra.mxu1 %v3043_v6  ;;  %v3076_v6 = vpack.c.bf16 %v1399_v5, %v1398_v4 }
 0x461   :  { %3048 = vmatprep.subr.bf16.mxu1 %v3269_v7 }
 0x532   :  { %v2741_v62 = vpop.f32.mrb[4].mxu1 }
 0x533   :  { %v3335_v63 = vadd.f32 %v2741_v62, %v2508_v61  ;;  %v564_v0 = vpop.f32.mrb[5].mxu1  ;;  %v1396_v62 = vld [vmem:[#allocation2 + $0x168] sm:$0xff] }
 0x534   :  { %v3337_v1 = vadd.f32 %v2508_v61, %v564_v0  ;;  %v3055_v61 = vpack.c.bf16 %v981_v60, %v980_v59  ;;  %v1397_v0 = vld [vmem:[#allocation2 + $0x170] sm:$0xff]  ;;  %v1489_v59 = vld [vmem:[#allocation2 + $0x1f8] sm:$0xff] }
 0x535   :  { %1756 = vrot.lane.b32.xlu1 %v3335_v63, %s3267_s30  ;;  %1752 = vrot.lane.b32.xlu0 %v3335_v63, %s3268_s4 }
 0x536   :  { %v2454_v3 = vsel %vm579_vm2, %v3337_v1, 0.0  ;;  %2745 = vmatmul.mubr.msk.f32.vlgmr.msra.gmra.mrb[6].mxu0 %vm579_vm2, %v3337_v1 }
 0x537   :  { %2486 = vst [vmem:[%s3572_s3] sm:$0xff] %v2454_v3  ;;  %2758 = vmatprep.mubr.msk.f32.mxu0 %vm3266_vm1, %v3265_v50  ;;  %3047 = vmatpush3.bf16.msra.mxu0 %v3046_v15  ;;  %v3073_v3 = vpack.c.bf16 %v1397_v0, %v1396_v62  ;;  %v1490_v0 = vld [vmem:[#allocation2 + $0x200] sm:$0xff] }
 0x538   :  { %3051 = vmatprep.subr.bf16.mxu0 %v3269_v7 }
 0x609   :  { %v649_v9 = vpop.f32.mrb[6].mxu0 }
 0x60a   :  { %v650_v10 = vadd.f32 %v2511_v8, %v649_v9  ;;  %v2746_v11 = vpop.f32.mrb[7].mxu0  ;;  %v1400_v8 = vld [vmem:[#allocation2 + $0x188] sm:$0xff]  ;;  %v1401_v9 = vld [vmem:[#allocation2 + $0x190] sm:$0xff] }
 0x60b   :  { %v1366_v11 = vlaneseq }
 0x60c   :  { %v653_v12 = vmax.f32 %v650_v10, 0.0  ;;  %v3079_v10 = vpack.c.bf16 %v1401_v9, %v1400_v8  ;;  %v1493_v8 = vld [vmem:[#allocation2 + $0x218] sm:$0xff] }
 0x60e   :  { %2752 = vmatmul.mubr.msk.f32.vlgmr.msra.gmra.mrb[6].mxu1 %vm37_vm0, %v653_v12 }
 0x60f   :  { %2765 = vmatprep.mubr.msk.f32.mxu1 %vm3266_vm1, %v3265_v50  ;;  %3050 = vmatpush3.bf16.msra.mxu1 %v3049_v23  ;;  %v1062_v23 = vld [vmem:[%s3571_s2 + $0x10] sm:$0xff] }
 0x610   :  { %3054 = vmatprep.subr.bf16.mxu1 %v3269_v7 }
 0x6e1   :  { %v730_v17 = vpop.f32.mrb[6].mxu1 }
 0x6e2   :  { %v731_v18 = vadd.f32 %v2513_v16, %v730_v17  ;;  %v2753_v19 = vpop.f32.mrb[7].mxu1  ;;  %v3406_v16 = vshrl.u32 %v1366_v11, 7 }
 0x6e3   :  { %v1065_v19 = vld [vmem:[%s3571_s2 + $0x28] sm:$0xf]  ;;  %s3270_s2 = smov 64  }
 0x6e4   :  { %v734_v20 = vmax.f32 %v731_v18, 0.0  ;;  %v1372_v62 = vsub.s32 1, %v3406_v16 }
 0x6e6   :  { %2759 = vmatmul.mubr.msk.f32.vlgmr.msra.gmra.mrb[8].mxu0 %vm37_vm0, %v734_v20  ;;  %v1368_v20 = vsub.s32 0, %v3406_v16  ;;  %v1373_v5 = vrot.slane %v3417_v21, %v1372_v62 }
 0x6e7   :  { %2772 = vmatprep.mubr.msk.f32.mxu0 %vm3266_vm1, %v3265_v50  ;;  %3053 = vmatpush3.bf16.msra.mxu0 %v3052_v32  ;;  %v1480_v32 = vld [vmem:[#allocation2 + $0x1b0] sm:$0xff] }
 0x6e8   :  { %2523 = vmatprep.subr.msk.mxu0 %vm1071_vm3, %v1064_v33  ;;  %v1369_v22 = vrot.slane %v3417_v21, %v1368_v20  ;;  %v1481_v33 = vld [vmem:[#allocation2 + $0x1b8] sm:$0xff] }
 0x6e9   :  { %v1585_v20 = vld [vmem:[#allocation2 + $0x298] sm:$0xff] }
 0x7b9   :  { %v811_v25 = vpop.f32.mrb[8].mxu0 }
 0x7ba   :  { %v812_v26 = vadd.f32 %v2515_v24, %v811_v25  ;;  %v2760_v27 = vpop.f32.mrb[9].mxu0  ;;  %v1478_v24 = vld [vmem:[#allocation2 + $0x1a0] sm:$0xff]  ;;  %v1479_v25 = vld [vmem:[#allocation2 + $0x1a8] sm:$0xff] }
 0x7bb   :  { %v1572_v27 = vld [vmem:[#allocation2 + $0x230] sm:$0xff] }
 0x7bc   :  { %v3362_v28 = vadd.f32 %v812_v26, %v653_v12  ;;  %v2519_v12 = vld [vmem:[#allocation2 + $0xf8] ss:$0 sm:$0xff]  ;;  %v1571_v26 = vld [vmem:[#allocation2 + $0x228] sm:$0xff] }
 0x7be   :  { %v816_v29 = vmax.f32 %v3362_v28, 0.0 }
 0x7c0   :  { %2766 = vmatmul.mubr.msk.f32.vlgmr.msra.gmra.mrb[8].mxu1 %vm37_vm0, %v816_v29 }
 0x7c1   :  { %2779 = vmatprep.mubr.msk.f32.mxu1 %vm3266_vm1, %v3265_v50  ;;  %3056 = vmatpush3.bf16.msra.mxu1 %v3055_v61 }
 0x7c2   :  { %2782 = vmatprep.subr.mxu1 %v3265_v50 }
 0x893   :  { %v893_v35 = vpop.f32.mrb[8].mxu1 }
 0x894   :  { %v894_v36 = vadd.f32 %v2517_v34, %v893_v35  ;;  %v2767_v37 = vpop.f32.mrb[9].mxu1  ;;  %v3106_v34 = vpack.c.bf16 %v1572_v27, %v1571_v26  ;;  %v1663_v27 = vld [vmem:[#allocation2 + $0x2b8] sm:$0xff] }
 0x895   :  { %v1574_v37 = vld [vmem:[#allocation2 + $0x240] sm:$0xff] }
 0x896   :  { %v897_v38 = vmax.f32 %v894_v36, 0.0  ;;  %v1573_v36 = vld [vmem:[#allocation2 + $0x238] sm:$0xff] }
 0x898   :  { %2773 = vmatmul.mubr.msk.f32.vlgmr.msra.gmra.mrb[10].mxu0 %vm37_vm0, %v897_v38  ;;  %v3085_v38 = vpack.c.bf16 %v1481_v33, %v1480_v32  ;;  %v1667_v32 = vld [vmem:[#allocation2 + $0x2d8] sm:$0xff] }
 0x899   :  { %2524 = vmatpush1.msk.msra.mxu0 %vm1071_vm3, %v1063_v39  ;;  %1145 = vmatprep.mubr.f32.mxu0 %v3265_v50  ;;  %v1482_v39 = vld [vmem:[#allocation2 + $0x1c0] sm:$0xff] }
 0x89a   :  { %1222 = vmatprep.subr.mxu0 %v1061_v40  ;;  %v1483_v40 = vld [vmem:[#allocation2 + $0x1c8] sm:$0xff] }
 0x89b   :  { %v3088_v44 = vpack.c.bf16 %v1483_v40, %v1482_v39  ;;  %v1671_v39 = vld [vmem:[#allocation2 + $0x2f8] sm:$0xff]  ;;  %v1672_v40 = vld [vmem:[#allocation2 + $0x300] sm:$0xff] }
 0x89c   :  { %2525 = vmatmul.mubr.msk.f32.vlgmr.msra.gmra.mrb[12].mxu0 %vm1068_vm4, %v3386_v42 }
 0x89d   :  { %1223 = vmatpush1.msra.mxu0 %v1060_v41  ;;  %1286 = vmatprep.mubr.f32.mxu0 %v3265_v50  ;;  %v3109_v41 = vpack.c.bf16 %v1574_v37, %v1573_v36  ;;  %v1669_v36 = vld [vmem:[#allocation2 + $0x2e8] sm:$0xff]  ;;  %v1670_v37 = vld [vmem:[#allocation2 + $0x2f0] sm:$0xff] }
 0x89e   :  { %3057 = vmatprep.subr.bf16.mxu0 %v3269_v7 }
 0x8a4   :  { %2528 = vmatmul.mubr.msk.f32.vlgmr.msra.gmra.mrb[12].mxu0 %vm579_vm2, %v3337_v1 }
 0x8a5   :  { %3059 = vmatpush3.bf16.msra.mxu0 %v3058_v45  ;;  %2824 = vmatprep.mubr.msk.f32.mxu0 %vm3266_vm1, %v3265_v50  ;;  %v1484_v45 = vld [vmem:[#allocation2 + $0x1d0] sm:$0xff] }
 0x8a6   :  { %3060 = vmatprep.subr.bf16.mxu0 %v3269_v7  ;;  %v3091_v51 = vpack.c.bf16 %v1485_v46, %v1484_v45  ;;  %v1675_v45 = vld [vmem:[#allocation2 + $0x318] sm:$0xff]  ;;  %v1676_v46 = vld [vmem:[#allocation2 + $0x320] sm:$0xff] }
 0x8a9   :  { %3062 = vmatpush3.bf16.msra.mxu0 %v3061_v48  ;;  %v1577_v48 = vld [vmem:[#allocation2 + $0x258] sm:$0xff] }
 0x8aa   :  { %3063 = vmatprep.subr.bf16.mxu0 %v3269_v7  ;;  %v3115_v54 = vpack.c.bf16 %v1578_v49, %v1577_v48 }
 0x8ad   :  { %3065 = vmatpush3.bf16.msra.mxu0 %v3064_v52  ;;  %v1486_v52 = vld [vmem:[#allocation2 + $0x1e0] sm:$0xff] }
 0x8ae   :  { %3066 = vmatprep.subr.bf16.mxu0 %v3269_v7  ;;  %v3094_v57 = vpack.c.bf16 %v1487_v53, %v1486_v52 }
 0x8b1   :  { %3068 = vmatpush3.bf16.msra.mxu0 %v3067_v55  ;;  %v1579_v55 = vld [vmem:[#allocation2 + $0x268] sm:$0xff] }
 0x8b2   :  { %3069 = vmatprep.subr.bf16.mxu0 %v3269_v7  ;;  %v3118_v60 = vpack.c.bf16 %v1580_v56, %v1579_v55  ;;  %v2531_v56 = vld [vmem:[#allocation2 + $0x198] ss:$0 sm:$0xff] }
 0x8b5   :  { %3071 = vmatpush3.bf16.msra.mxu0 %v3070_v58  ;;  %v1488_v58 = vld [vmem:[#allocation2 + $0x1f0] sm:$0xff] }
 0x8b6   :  { %3072 = vmatprep.subr.bf16.mxu0 %v3269_v7  ;;  %v3097_v61 = vpack.c.bf16 %v1489_v59, %v1488_v58 }
 0x8b9   :  { %3074 = vmatpush3.bf16.msra.mxu0 %v3073_v3  ;;  %v1491_v3 = vld [vmem:[#allocation2 + $0x208] sm:$0xff] }
 0x8ba   :  { %3075 = vmatprep.subr.bf16.mxu0 %v3269_v7  ;;  %v3100_v4 = vpack.c.bf16 %v1491_v3, %v1490_v0  ;;  %v1760_v3 = vld [vmem:[#allocation2 + $0x330] sm:$0xff] }
 0x8bd   :  { %3077 = vmatpush3.bf16.msra.mxu0 %v3076_v6  ;;  %v1492_v6 = vld [vmem:[#allocation2 + $0x210] sm:$0xff] }
 0x8be   :  { %3078 = vmatprep.subr.bf16.mxu0 %v3269_v7  ;;  %v3103_v9 = vpack.c.bf16 %v1493_v8, %v1492_v6  ;;  %v1836_v6 = vld [vmem:[#allocation2 + $0x340] sm:$0xff] }
 0x8c1   :  { %3080 = vmatpush3.bf16.msra.mxu0 %v3079_v10 }
 0x8c2   :  { %3105 = vmatprep.subr.bf16.mxu0 %v3269_v7 }
 0x96b   :  { %v974_v13 = vpop.f32.mrb[10].mxu0 }
 0x96c   :  { %v975_v14 = vadd.f32 %v2519_v12, %v974_v13  ;;  %v2774_v15 = vpop.f32.mrb[11].mxu0  ;;  %v1581_v13 = vld [vmem:[#allocation2 + $0x278] sm:$0xff] }
 0x96e   :  { %v978_v17 = vadd.f32 %v975_v14, %v816_v29  ;;  %v3082_v29 = vpack.c.bf16 %v1479_v25, %v1478_v24  ;;  %v1582_v14 = vld [vmem:[#allocation2 + $0x280] sm:$0xff]  ;;  %v1661_v24 = vld [vmem:[#allocation2 + $0x2a8] sm:$0xff]  ;;  %v1662_v25 = vld [vmem:[#allocation2 + $0x2b0] sm:$0xff] }
 0x96f   :  { %v3121_v15 = vpack.c.bf16 %v1582_v14, %v1581_v13  ;;  %v3130_v26 = vpack.c.bf16 %v1662_v25, %v1661_v24  ;;  %v1837_v14 = vld [vmem:[#allocation2 + $0x348] sm:$0xff]  ;;  %v1923_v25 = vld [vmem:[#allocation2 + $0x380] sm:$0xff] }
 0x970   :  { %v979_v18 = vmax.f32 %v978_v17, 0.0  ;;  %v1583_v17 = vld [vmem:[#allocation2 + $0x288] sm:$0xff] }
 0x972   :  { %2780 = vmatmul.mubr.msk.f32.vlgmr.msra.gmra.mrb[10].mxu1 %vm37_vm0, %v979_v18  ;;  %v1584_v18 = vld [vmem:[#allocation2 + $0x290] sm:$0xff] }
 0x973   :  { %2783 = vmatpush3.msk.msra.mxu1 %vm1071_vm3, %v1065_v19  ;;  %2784 = vmatprep.mubr.msk.f32.mxu1 %vm3266_vm1, %v3265_v50  ;;  %v3124_v19 = vpack.c.bf16 %v1584_v18, %v1583_v17  ;;  %v1839_v18 = vld [vmem:[#allocation2 + $0x358] sm:$0xff] }
 0x974   :  { %2787 = vmatprep.subr.mxu1 %v3265_v50 }
 0x976   :  { %2785 = vmatmul.mubr.msk.f32.vlgmr.msra.gmra.mrb[12].mxu1 %vm1068_vm4, %v3386_v42  ;;  %v1575_v42 = vld [vmem:[#allocation2 + $0x248] sm:$0xff] }
 0x977   :  { %v1288_v28 = vpop.f32.mrb[12].mxu0  ;;  %2788 = vmatpush3.msra.mxu1 %v1062_v23  ;;  %2789 = vmatprep.mubr.msk.f32.mxu1 %vm3266_vm1, %v3265_v50  ;;  %v3112_v47 = vpack.c.bf16 %v1576_v43, %v1575_v42  ;;  %v1673_v42 = vld [vmem:[#allocation2 + $0x308] sm:$0xff]  ;;  %v1674_v43 = vld [vmem:[#allocation2 + $0x310] sm:$0xff] }
 0x978   :  { %v1381_v30 = vadd.f32 %v1369_v22, %v1288_v28  ;;  %v3432_v31 = vpop.f32.mrb[13].mxu0  ;;  %3081 = vmatprep.subr.bf16.mxu1 %v3269_v7  ;;  %v1586_v22 = vld [vmem:[#allocation2 + $0x2a0] sm:$0xff] }
 0x979   :  { %v1382_v10 = vadd.f32 %v1373_v5, %v3432_v31  ;;  %v3127_v23 = vpack.c.bf16 %v1586_v22, %v1585_v20  ;;  %v1664_v28 = vld [vmem:[#allocation2 + $0x2c0] sm:$0xff]  ;;  %v1666_v31 = vld [vmem:[#allocation2 + $0x2d0] sm:$0xff]  ;;  %v1835_v5 = vld [vmem:[#allocation2 + $0x338] sm:$0xff] }
 0x97a   :  { %v1384_v35 = vmax.f32 %v1381_v30, 0.0  ;;  %2790 = vmatmul.mubr.msk.f32.vlgmr.msra.gmra.mrb[14].mxu1 %vm579_vm2, %v3337_v1  ;;  %v1665_v30 = vld [vmem:[#allocation2 + $0x2c8] sm:$0xff] }
 0x97b   :  { %3083 = vmatpush3.bf16.msra.mxu1 %v3082_v29  ;;  %2859 = vmatprep.mubr.msk.f32.mxu1 %vm3266_vm1, %v3265_v50  ;;  %v1385_v12 = vmax.f32 %v1382_v10, 0.0  ;;  %v3133_v29 = vpack.c.bf16 %v1664_v28, %v1663_v27  ;;  %v3136_v33 = vpack.c.bf16 %v1666_v31, %v1665_v30  ;;  %v1841_v22 = vld [vmem:[#allocation2 + $0x368] sm:$0xff]  ;;  %v1925_v27 = vld [vmem:[#allocation2 + $0x390] sm:$0xff]  ;;  %v1927_v31 = vld [vmem:[#allocation2 + $0x3a0] sm:$0xff] }
 0x97c   :  { %2825 = vmatmul.mubr.f32.vlgmr.msra.gmra.mrb[14].mxu0 %v1384_v35  ;;  %3084 = vmatprep.subr.bf16.mxu1 %v3269_v7 }
 0x97d   :  { %3107 = vmatpush3.bf16.msra.mxu0 %v3106_v34  ;;  %2894 = vmatprep.mubr.msk.f32.mxu0 %vm3266_vm1, %v3265_v50  ;;  %v1668_v34 = vld [vmem:[#allocation2 + $0x2e0] sm:$0xff] }
 0x97e   :  { %3108 = vmatprep.subr.bf16.mxu0 %v3269_v7  ;;  %v3139_v35 = vpack.c.bf16 %v1668_v34, %v1667_v32  ;;  %v1928_v32 = vld [vmem:[#allocation2 + $0x3a8] sm:$0xff] }
 0x97f   :  { %3086 = vmatpush3.bf16.msra.mxu1 %v3085_v38  ;;  %v3142_v38 = vpack.c.bf16 %v1670_v37, %v1669_v36 }
 0x980   :  { %3087 = vmatprep.subr.bf16.mxu1 %v3269_v7 }
 0x981   :  { %3110 = vmatpush3.bf16.msra.mxu0 %v3109_v41  ;;  %v3145_v41 = vpack.c.bf16 %v1672_v40, %v1671_v39 }
 0x982   :  { %3111 = vmatprep.subr.bf16.mxu0 %v3269_v7 }
 0x983   :  { %3089 = vmatpush3.bf16.msra.mxu1 %v3088_v44  ;;  %v3148_v44 = vpack.c.bf16 %v1674_v43, %v1673_v42  ;;  %v1929_v42 = vld [vmem:[#allocation2 + $0x3b0] sm:$0xff]  ;;  %v1930_v43 = vld [vmem:[#allocation2 + $0x3b8] sm:$0xff] }
 0x984   :  { %3090 = vmatprep.subr.bf16.mxu1 %v3269_v7 }
 0x985   :  { %3113 = vmatpush3.bf16.msra.mxu0 %v3112_v47  ;;  %v3151_v47 = vpack.c.bf16 %v1676_v46, %v1675_v45  ;;  %v2535_v45 = vld [vmem:[#allocation2 + $0x378] ss:$0 sm:$0xff] }
 0x986   :  { %3114 = vmatprep.subr.bf16.mxu0 %v3269_v7 }
 0x987   :  { %3092 = vmatpush3.bf16.msra.mxu1 %v3091_v51  ;;  %v1376_v51 = vsub.s32 2, %v3406_v16 }
 0x988   :  { %3093 = vmatprep.subr.bf16.mxu1 %v3269_v7 }
 0x989   :  { %3116 = vmatpush3.bf16.msra.mxu0 %v3115_v54  ;;  %v1377_v54 = vrot.slane %v3417_v21, %v1376_v51  ;;  %v2532_v21 = vld [vmem:[#allocation2 + $0x220] ss:$0 sm:$0xff] }
 0x98a   :  { %3117 = vmatprep.subr.bf16.mxu0 %v3269_v7 }
 0x98b   :  { %3095 = vmatpush3.bf16.msra.mxu1 %v3094_v57 }
 0x98c   :  { %3096 = vmatprep.subr.bf16.mxu1 %v3269_v7 }
 0x98d   :  { %3119 = vmatpush3.bf16.msra.mxu0 %v3118_v60 }
 0x98e   :  { %3120 = vmatprep.subr.bf16.mxu0 %v3269_v7 }
 0x98f   :  { %3098 = vmatpush3.bf16.msra.mxu1 %v3097_v61 }
 0x990   :  { %3099 = vmatprep.subr.bf16.mxu1 %v3269_v7 }
 0x991   :  { %3122 = vmatpush3.bf16.msra.mxu0 %v3121_v15  ;;  %v1838_v15 = vld [vmem:[#allocation2 + $0x350] sm:$0xff] }
 0x992   :  { %3123 = vmatprep.subr.bf16.mxu0 %v3269_v7  ;;  %v3157_v17 = vpack.c.bf16 %v1838_v15, %v1837_v14  ;;  %v2114_v14 = vld [vmem:[#allocation2 + $0x3e0] sm:$0xff] }
 0x993   :  { %3101 = vmatpush3.bf16.msra.mxu1 %v3100_v4  ;;  %v1753_v4 = vpop.permute.xlu0 %1752 }
 0x994   :  { %3102 = vmatprep.subr.bf16.mxu1 %v3269_v7  ;;  %v3479_v16 = vsel %vm1068_vm4, %v3335_v63, %v1753_v4 }
 0x995   :  { %3125 = vmatpush3.bf16.msra.mxu0 %v3124_v19  ;;  %v1840_v19 = vld [vmem:[#allocation2 + $0x360] sm:$0xff] }
 0x996   :  { %3126 = vmatprep.subr.bf16.mxu0 %v3269_v7  ;;  %v3160_v20 = vpack.c.bf16 %v1840_v19, %v1839_v18 }
 0x997   :  { %3104 = vmatpush3.bf16.msra.mxu1 %v3103_v9 }
 0x998   :  { %3129 = vmatprep.subr.bf16.mxu1 %v3269_v7 }
 0x999   :  { %3128 = vmatpush3.bf16.msra.mxu0 %v3127_v23  ;;  %v1842_v23 = vld [vmem:[#allocation2 + $0x370] sm:$0xff] }
 0x99a   :  { %2860 = vmatmul.mubr.f32.vlgmr.msra.gmra.mrb[16].mxu1 %v1385_v12  ;;  %2932 = vmatprep.subr.mxu0 %v3265_v50  ;;  %v3154_v12 = vpack.c.bf16 %v1836_v6, %v1835_v5  ;;  %v3163_v24 = vpack.c.bf16 %v1842_v23, %v1841_v22 }
 0x99b   :  { %2929 = vmatprep.mubr.msk.f32.mxu1 %vm3266_vm1, %v3265_v50  ;;  %3131 = vmatpush3.bf16.msra.mxu1 %v3130_v26  ;;  %v1924_v26 = vld [vmem:[#allocation2 + $0x388] sm:$0xff] }
 0x99c   :  { %3132 = vmatprep.subr.bf16.mxu1 %v3269_v7  ;;  %v3166_v28 = vpack.c.bf16 %v1924_v26, %v1923_v25 }
 0x99f   :  { %3134 = vmatpush3.bf16.msra.mxu1 %v3133_v29  ;;  %v1926_v29 = vld [vmem:[#allocation2 + $0x398] sm:$0xff] }
 0x9a0   :  { %3135 = vmatprep.subr.bf16.mxu1 %v3269_v7  ;;  %v3169_v30 = vpack.c.bf16 %v1926_v29, %v1925_v27  ;;  %v2116_v27 = vld [vmem:[#allocation2 + $0x3f0] sm:$0xff] }
 0x9a3   :  { %3137 = vmatpush3.bf16.msra.mxu1 %v3136_v33  ;;  %v3172_v33 = vpack.c.bf16 %v1928_v32, %v1927_v31  ;;  %v2119_v31 = vld [vmem:[#allocation2 + $0x408] sm:$0xff] }
 0x9a4   :  { %3138 = vmatprep.subr.bf16.mxu1 %v3269_v7 }
 0x9a7   :  { %3140 = vmatpush3.bf16.msra.mxu1 %v3139_v35 }
 0x9a8   :  { %3141 = vmatprep.subr.bf16.mxu1 %v3269_v7 }
 0x9ab   :  { %3143 = vmatpush3.bf16.msra.mxu1 %v3142_v38 }
 0x9ac   :  { %3144 = vmatprep.subr.bf16.mxu1 %v3269_v7 }
 0x9af   :  { %3146 = vmatpush3.bf16.msra.mxu1 %v3145_v41 }
 0x9b0   :  { %3147 = vmatprep.subr.bf16.mxu1 %v3269_v7 }
 0x9b3   :  { %3149 = vmatpush3.bf16.msra.mxu1 %v3148_v44  ;;  %v3175_v44 = vpack.c.bf16 %v1930_v43, %v1929_v42 }
 0x9b4   :  { %3150 = vmatprep.subr.bf16.mxu1 %v3269_v7 }
 0x9b7   :  { %3152 = vmatpush3.bf16.msra.mxu1 %v3151_v47 }
 0x9b8   :  { %3153 = vmatprep.subr.bf16.mxu1 %v3269_v7 }
 0xa45   :  { %v3470_v48 = vpop.f32.mrb[10].mxu1 }
 0xa46   :  { %v2781_v49 = vpop.f32.mrb[11].mxu1 }
 0xa49   :  { %v1218_v52 = vpop.f32.mrb[12].mxu1 }
 0xa4a   :  { %v2786_v53 = vpop.f32.mrb[13].mxu1 }
 0xa4d   :  { %v1359_v55 = vpop.f32.mrb[14].mxu1 }
 0xa4e   :  { %v1360_v57 = vadd.f32 %v1359_v55, %v1218_v52  ;;  %v2791_v58 = vpop.f32.mrb[15].mxu1  ;;  %v2537_v52 = vld [vmem:[#allocation2 + $0x3c0] ss:$0 sm:$0xff] }
 0xa4f   :  { %v1473_v59 = vpop.f32.mrb[14].mxu0  ;;  %v2033_v58 = vld [vmem:[#allocation2 + $0x3c8] sm:$0xff] }
 0xa50   :  { %v1383_v60 = vadd.f32 %v1377_v54, %v1360_v57  ;;  %v1474_v61 = vadd.f32 %v2531_v56, %v1473_v59  ;;  %v2826_v62 = vpop.f32.mrb[15].mxu0 }
 0xa52   :  { %v1477_v0 = vmax.f32 %v1474_v61, 0.0  ;;  %2035 = vrot.lane.b32.xlu0 %v1383_v60, %s3270_s2  ;;  %v1757_v61 = vpop.permute.xlu1 %1756 }
 0xa53   :  { %v1759_v62 = vsel %vm1068_vm4, %v1757_v61, %v3335_v63 }
 0xa54   :  { %2895 = vmatmul.mubr.f32.vlgmr.msra.gmra.mrb[16].mxu0 %v1477_v0 }
 0xa55   :  { %2933 = vmatpush3.msra.mxu0 %v1760_v3  ;;  %2934 = vmatprep.mubr.msk.f32.mxu0 %vm3266_vm1, %v3265_v50 }
 0xa56   :  { %3165 = vmatprep.subr.bf16.mxu0 %v3269_v7 }
 0xa58   :  { %2935 = vmatmul.mubr.msk.f32.vlgmr.msra.gmra.mrb[18].mxu0 %vm579_vm2, %v3479_v16 }
 0xa59   :  { %2972 = vmatprep.mubr.msk.f32.mxu0 %vm3266_vm1, %v3265_v50  ;;  %3167 = vmatpush3.bf16.msra.mxu0 %v3166_v28  ;;  %v2117_v28 = vld [vmem:[#allocation2 + $0x3f8] sm:$0xff] }
 0xa5a   :  { %3168 = vmatprep.subr.bf16.mxu0 %v3269_v7  ;;  %v3184_v29 = vpack.c.bf16 %v2117_v28, %v2116_v27 }
 0xa5d   :  { %3170 = vmatpush3.bf16.msra.mxu0 %v3169_v30  ;;  %v2118_v30 = vld [vmem:[#allocation2 + $0x400] sm:$0xff] }
 0xa5e   :  { %3171 = vmatprep.subr.bf16.mxu0 %v3269_v7  ;;  %v3187_v32 = vpack.c.bf16 %v2119_v31, %v2118_v30 }
 0xa61   :  { %3173 = vmatpush3.bf16.msra.mxu0 %v3172_v33  ;;  %v2199_v33 = vld [vmem:[#allocation2 + $0x418] sm:$0xff] }
 0xa62   :  { %3174 = vmatprep.subr.bf16.mxu0 %v3269_v7 }
 0xa65   :  { %3176 = vmatpush3.bf16.msra.mxu0 %v3175_v44 }
 0xa66   :  { %3177 = vmatprep.subr.bf16.mxu0 %v3269_v7 }
 0xa6d   :  { %v1565_v8 = vpop.f32.mrb[16].mxu1 }
 0xa6e   :  { %v1566_v9 = vadd.f32 %v2532_v21, %v1565_v8  ;;  %v2861_v10 = vpop.f32.mrb[17].mxu1 }
 0xa70   :  { %v1569_v13 = vmax.f32 %v1566_v9, 0.0 }
 0xa72   :  { %2930 = vmatmul.mubr.f32.vlgmr.msra.gmra.mrb[18].mxu1 %v1569_v13  ;;  %v2113_v13 = vld [vmem:[#allocation2 + $0x3d8] sm:$0xff] }
 0xa73   :  { %3155 = vmatpush3.bf16.msra.mxu1 %v3154_v12  ;;  %2953 = vmatprep.mubr.msk.f32.mxu1 %vm3266_vm1, %v3265_v50  ;;  %v2112_v12 = vld [vmem:[#allocation2 + $0x3d0] sm:$0xff] }
 0xa74   :  { %3156 = vmatprep.subr.bf16.mxu1 %v3269_v7  ;;  %v3178_v15 = vpack.c.bf16 %v2113_v13, %v2112_v12  ;;  %v3236_v13 = vld [vmem:[%s3569_s0] sm:$0xff] }
 0xa77   :  { %3158 = vmatpush3.bf16.msra.mxu1 %v3157_v17  ;;  %v2115_v17 = vld [vmem:[#allocation2 + $0x3e8] sm:$0xff] }
 0xa78   :  { %3159 = vmatprep.subr.bf16.mxu1 %v3269_v7 }
 0xa7b   :  { %3161 = vmatpush3.bf16.msra.mxu1 %v3160_v20 }
 0xa7c   :  { %3162 = vmatprep.subr.bf16.mxu1 %v3269_v7 }
 0xa7f   :  { %3164 = vmatpush3.bf16.msra.mxu1 %v3163_v24 }
 0xa80   :  { %2975 = vmatprep.subr.mxu1 %v3265_v50 }
 0xb27   :  { %v3494_v34 = vpop.f32.mrb[16].mxu0 }
 0xb28   :  { %v2896_v35 = vpop.f32.mrb[17].mxu0 }
 0xb29   :  { %v2201_v35 = vld [vmem:[#allocation2 + $0x428] sm:$0xff] }
 0xb2b   :  { %v1830_v36 = vpop.f32.mrb[18].mxu0 }
 0xb2c   :  { %v1831_v37 = vadd.f32 %v1830_v36, %v1383_v60  ;;  %v2936_v38 = vpop.f32.mrb[19].mxu0  ;;  %v2533_v60 = vld [vmem:[#allocation2 + $0x328] ss:$0 sm:$0xff] }
 0xb2d   :  { %v1658_v18 = vadd.f32 %v2533_v60, %v3494_v34  ;;  %v2200_v34 = vld [vmem:[#allocation2 + $0x420] sm:$0xff] }
 0xb2e   :  { %v1834_v39 = vmax.f32 %v1831_v37, 0.0  ;;  %v3190_v36 = vpack.c.bf16 %v2200_v34, %v2199_v33  ;;  %v2202_v37 = vld [vmem:[#allocation2 + $0x430] sm:$0xff] }
 0xb2f   :  { %v3193_v38 = vpack.c.bf16 %v2202_v37, %v2201_v35  ;;  %v2521_v35 = vld [vmem:[#allocation2 + $0x110] ss:$0 sm:$0xff] }
 0xb30   :  { %2954 = vmatmul.mubr.msk.f32.vlgmr.msra.gmra.mrb[20].mxu1 %vm1848_vm5, %v1834_v39  ;;  %v2203_v39 = vld [vmem:[#allocation2 + $0x438] sm:$0xff]  ;;  %v1057_v37 = vadd.f32 %v2521_v35, %v3470_v48 }
 0xb31   :  { %2977 = vmatprep.mubr.msk.f32.mxu1 %vm3266_vm1, %v3265_v50  ;;  %2976 = vmatpush3.msra.mxu1 %v2033_v58  ;;  %v2206_v58 = vld [vmem:[#allocation2 + $0x450] sm:$0xff] }
 0xb32   :  { %3189 = vmatprep.subr.bf16.mxu1 %v3269_v7 }
 0xb45   :  { %v1747_v40 = vpop.f32.mrb[18].mxu1 }
 0xb46   :  { %v2931_v41 = vpop.f32.mrb[19].mxu1 }
 0xc03   :  { %v1918_v46 = vpop.f32.mrb[20].mxu1 }
 0xc04   :  { %v1919_v47 = vadd.f32 %v2535_v45, %v1918_v46  ;;  %v2955_v49 = vpop.f32.mrb[21].mxu1 }
 0xc06   :  { %v1922_v51 = vmax.f32 %v1919_v47, 0.0  ;;  %v2036_v47 = vpop.permute.xlu0 %2035 }
 0xc08   :  { %2973 = vmatmul.mubr.msk.f32.vlgmr.msra.gmra.mrb[20].mxu0 %vm1848_vm5, %v1922_v51 }
 0xc09   :  { %2996 = vmatprep.mubr.msk.f32.mxu0 %vm3266_vm1, %v3265_v50  ;;  %3179 = vmatpush3.bf16.msra.mxu0 %v3178_v15 }
 0xc0a   :  { %3180 = vmatprep.subr.bf16.mxu0 %v3269_v7 }
 0xcdb   :  { %v2005_v53 = vpop.f32.mrb[20].mxu0 }
 0xcdc   :  { %v2006_v54 = vadd.f32 %v2537_v52, %v2005_v53  ;;  %v2974_v55 = vpop.f32.mrb[21].mxu0 }
 0xcde   :  { %3222 = vtanh.f32 %v2006_v54 }
 0xce8   :  { %v3223_v56 = vpop.eup %3222 }
 0xce9   :  { %v2010_v57 = vmul.f32 1.442695, %v3223_v56 }
 0xceb   :  { %3224 = vpow2.f32 %v2010_v57 }
 0xcf5   :  { %v3225_v59 = vpop.eup %3224 }
 0xcf6   :  { %2013 = vrot.lane.b32.xlu1 %v3225_v59, %s3271_s21 }
 0xcfa   :  { %1678 = vrot.lane.b32.xlu1 %v2533_v60, %s3272_s22  ;;  %v2540_v60 = vld [vmem:[#allocation2 + $0x410] ss:$0 sm:$0xff] }
 0xcfe   :  { %2337 = vrot.lane.b32.xlu1 %v3311_v2, %s3273_s23 }
 0xd02   :  { %2019 = vrot.lane.b32.xlu1 %v3223_v56, %s3271_s21 }
 0xd06   :  { %2026 = vrot.lane.b32.xlu1 %v3223_v56, %s3274_s24 }
 0xd68   :  { %v2014_v0 = vpop.permute.xlu1 %2013 }
 0xd69   :  { %v2016_v3 = vmul.f32 %v2014_v0, %v1759_v62 }
 0xd6b   :  { %v2017_v4 = vadd.f32 %v2016_v3, %v2006_v54 }
 0xd6c   :  { %v1679_v21 = vpop.permute.xlu1 %1678 }
 0xd6d   :  { %v3510_v5 = vadd.f32 %v1747_v40, %v1679_v21  ;;  %2978 = vmatmul.mubr.msk.f32.vlgmr.msra.gmra.mrb[22].mxu1 %vm579_vm2, %v2017_v4  ;;  %v2314_v10 = vmul.f32 -0.5, %v2017_v4  ;;  %v2204_v40 = vld [vmem:[#allocation2 + $0x440] sm:$0xff] }
 0xd6e   :  { %3015 = vmatprep.mubr.msk.f32.mxu1 %vm3266_vm1, %v3265_v50  ;;  %v3181_v50 = vpack.c.bf16 %v2115_v17, %v2114_v14  ;;  %3191 = vmatpush3.bf16.msra.mxu1 %v3190_v36  ;;  %v3196_v41 = vpack.c.bf16 %v2204_v40, %v2203_v39  ;;  %v2384_v39 = vmul.f32 %v3337_v1, %v3337_v1 }
 0xd6f   :  { %v3518_v63 = vmul.f32 %v2314_v10, %v2017_v4  ;;  %3192 = vmatprep.subr.bf16.mxu1 %v3269_v7  ;;  %v2542_v4 = vld [vmem:[#allocation2 + $0x458] ss:$0 sm:$0xff]  ;;  %v2365_v15 = vand.u32 2147483647, %v3510_v5  ;;  %v2359_v27 = vmax.f32 %v3510_v5, 0.0  ;;  %v2400_v40 = vsub.f32 %v3236_v13, %v1057_v37 }
 0xd70   :  { %v2338_v2 = vpop.permute.xlu1 %2337  ;;  %3182 = vmatpush3.bf16.msra.mxu0 %v3181_v50 }
 0xd71   :  { %3183 = vmatprep.subr.bf16.mxu0 %v3269_v7  ;;  %v2340_v19 = vsub.f32 %v1658_v18, %v2338_v2  ;;  %v2366_v17 = vsub.f32 0.0, %v2365_v15  ;;  %v2401_v48 = vmul.f32 %v2400_v40, %v2400_v40 }
 0xd72   :  { %3194 = vmatpush3.bf16.msra.mxu1 %v3193_v38 }
 0xd73   :  { %v2341_v20 = vand.u32 2147483647, %v2340_v19  ;;  %v2343_v22 = vmul.f32 0.5, %v2340_v19  ;;  %3195 = vmatprep.subr.bf16.mxu1 %v3269_v7  ;;  %v2367_v50 = vmul.f32 1.442695, %v2366_v17 }
 0xd74   :  { %v3515_v6 = vpop.permute.xlu1 %2019  ;;  %3185 = vmatpush3.bf16.msra.mxu0 %v3184_v29 }
 0xd75   :  { %v2344_v23 = vmul.f32 %v2343_v22, %v2340_v19  ;;  %v2546_v24 = vadd.f32 -0.5, %v2341_v20  ;;  %vm2342_vm6 = vcmp.lt.f32.partialorder %v2341_v20, 1.0  ;;  %3186 = vmatprep.subr.bf16.mxu0 %v3269_v7  ;;  %v2022_v14 = vsel %vm1068_vm4, %v3515_v6, 0.0 }
 0xd76   :  { %3197 = vmatpush3.bf16.msra.mxu1 %v3196_v41  ;;  %v2316_v41 = vsel %vm1068_vm4, %v3518_v63, 0.0 }
 0xd77   :  { %v2346_v25 = vsel %vm2342_vm6, %v2344_v23, %v2546_v24  ;;  %3198 = vmatprep.subr.bf16.mxu1 %v3269_v7  ;;  %v2205_v7 = vld [vmem:[#allocation2 + $0x448] sm:$0xff] }
 0xd78   :  { %v2027_v8 = vpop.permute.xlu1 %2026  ;;  %v2348_v26 = vsel %vm2347_vm7, %v2346_v25, 0.0  ;;  %3188 = vmatpush3.bf16.msra.mxu0 %v3187_v32  ;;  %v3199_v59 = vpack.c.bf16 %v2206_v58, %v2205_v7 }
 0xd79   :  { %v2029_v9 = vsel %vm1068_vm4, %v2027_v8, 0.0 }
 0xd7a   :  { %2030 = vadd.xlane.f32.xlu1 %v2029_v9  ;;  %3200 = vmatpush3.bf16.msra.mxu1 %v3199_v59 }
 0xd8b   :  { %2329 = vrot.lane.b32.xlu1 %v3518_v63, %s3267_s30 }
 0xdaf   :  { %2349 = vadd.xlane.f32.xlu1 %v2348_v26 }
 0xe07   :  { %v3530_v42 = vpop.xlane.xlu1 %2030 }
 0xe0b   :  { %v3532_v43 = vpop.permute.xlu1 %2329 }
 0xe3c   :  { %v2350_v44 = vpop.xlane.xlu1 %2349 }
 0xe3d   :  { %v2351_v45 = vrot.slane %v2350_v44, 4 }
 0xe3f   :  { %v2352_v46 = vadd.f32 %v2351_v45, %v2350_v44  ;;  %v2385_v44 = vsel %vm579_vm2, %v2384_v39, 0.0  ;;  %v2332_v45 = vsel %vm1068_vm4, %v3532_v43, 0.0 }
 0xe40   :  { %v2107_v49 = vpop.f32.mrb[22].mxu1 }
 0xe41   :  { %v2353_v51 = vrot.slane %v2352_v46, 2  ;;  %v2108_v52 = vadd.f32 %v2107_v49, %v2036_v47  ;;  %v2979_v53 = vpop.f32.mrb[23].mxu1  ;;  %v2402_v47 = vsel %vm37_vm0, %v2401_v48, 0.0 }
 0xe43   :  { %v2111_v54 = vmax.f32 %v2108_v52, 0.0  ;;  %v2354_v55 = vadd.f32 %v2353_v51, %v2352_v46  ;;  %v2386_v46 = vrot.slane %v2385_v44, 4 }
 0xe45   :  { %2997 = vmatmul.mubr.msk.f32.vlgmr.msra.gmra.mrb[22].mxu0 %vm1848_vm5, %v2111_v54  ;;  %v2355_v56 = vrot.slane %v2354_v55, 1  ;;  %v2387_v49 = vadd.f32 %v2386_v46, %v2385_v44 }
 0xe47   :  { %v2356_v57 = vadd.f32 %v2355_v56, %v2354_v55  ;;  %v2388_v51 = vrot.slane %v2387_v49, 2 }
 0xe49   :  { %3203 = vpush %v2356_v57  ;;  %v2389_v52 = vadd.f32 %v2388_v51, %v2387_v49 }
 0xe4b   :  { %v2390_v1 = vrot.slane %v2389_v52, 1 }
 0xe4d   :  { %v2391_v53 = vadd.f32 %v2390_v1, %v2389_v52 }
 0xe4f   :  { %v2393_v54 = vmul.f32 0.125, %v2391_v53 }
 0xe7a   :  { %s3204_s0 = spop %3203 }
 0xf18   :  { %v2194_v61 = vpop.f32.mrb[22].mxu0 }
 0xf19   :  { %v2195_v62 = vadd.f32 %v2540_v60, %v2194_v61  ;;  %v2998_v0 = vpop.f32.mrb[23].mxu0 }
 0xf1b   :  { %v2198_v3 = vmax.f32 %v2195_v62, 0.0 }
 0xf1d   :  { %3016 = vmatmul.mubr.msk.f32.vlgmr.msra.gmra.mrb[24].mxu1 %vm1848_vm5, %v2198_v3 }
 0xff0   :  { %v2281_v21 = vpop.f32.mrb[24].mxu1 }
 0xff1   :  { %v2282_v2 = vadd.f32 %v2542_v4, %v2281_v21  ;;  %v3017_v8 = vpop.f32.mrb[25].mxu1 }
 0xff3   :  { %3226 = vtanh.f32 %v2282_v2 }
 0xffd   :  { %v3227_v9 = vpop.eup %3226 }
 0xffe   :  { %v2286_v10 = vmul.f32 1.442695, %v3227_v9 }
0x1000   :  { %3228 = vpow2.f32 %v2286_v10 }
0x1001   :  { %3230 = vpow2.f32 %v2367_v50 }
0x100a   :  { %v3229_v12 = vpop.eup %3228 }
0x100b   :  { %2289 = vrot.lane.b32.xlu0 %v3229_v12, %s3271_s21  ;;  %v3231_v24 = vpop.eup %3230 }
0x100c   :  { %v2369_v6 = vadd.f32 1.0, %v3231_v24 }
0x100e   :  { %3232 = vlog2.f32 %v2369_v6 }
0x100f   :  { %2360 = vrot.lane.b32.xlu0 %v3236_v13, %s3275_s27  ;;  %3234 = vlog2.f32 %v2393_v54 }
0x1018   :  { %v3233_v28 = vpop.eup %3232 }
0x1019   :  { %v2371_v30 = vmul.f32 0.6931472, %v3233_v28  ;;  %v3235_v63 = vpop.eup %3234 }
0x101a   :  { %v2395_v55 = vmul.f32 0.6931472, %v3235_v63 }
0x101c   :  { %v2396_v7 = vsub.f32 %v2393_v54, %v2395_v55 }
0x101e   :  { %v2397_v43 = vsel %vm579_vm2, %v2396_v7, 0.0 }
0x102e   :  { %2023 = vadd.xlane.f32.xlu0 %v2022_v14 }
0x1044   :  { %2295 = vrot.lane.b32.xlu0 %v3227_v9, %s3271_s21 }
0x1048   :  { %2302 = vrot.lane.b32.xlu0 %v3227_v9, %s3274_s24 }
0x107d   :  { %v2290_v18 = vpop.permute.xlu0 %2289 }
0x107e   :  { %v2292_v19 = vmul.f32 %v2290_v18, %v3479_v16 }
0x1080   :  { %v2293_v20 = vadd.f32 %v2292_v19, %v2282_v2 }
0x1081   :  { %v2361_v25 = vpop.permute.xlu0 %2360 }
0x1082   :  { %v2309_v22 = vmul.f32 -0.5, %v2293_v20  ;;  %v2363_v26 = vmul.f32 %v2361_v25, %v3510_v5 }
0x1084   :  { %v2310_v23 = vmul.f32 %v2309_v22, %v2293_v20  ;;  %v2364_v29 = vsub.f32 %v2359_v27, %v2363_v26 }
0x1086   :  { %2322 = vrot.lane.b32.xlu0 %v2310_v23, %s3267_s30  ;;  %v2372_v31 = vadd.f32 %v2371_v30, %v2364_v29  ;;  %v2311_v38 = vsel %vm1068_vm4, %v2310_v23, 0.0 }
0x1088   :  { %v2373_v16 = vsel %vm2347_vm7, %v2372_v31, 0.0 }
0x10a5   :  { %2374 = vadd.xlane.f32.xlu0 %v2373_v16 }
0x10bb   :  { %v2024_v32 = vpop.xlane.xlu0 %2023 }
0x10bf   :  { %v2296_v33 = vpop.permute.xlu0 %2295 }
0x10c0   :  { %v2298_v34 = vsel %vm1068_vm4, %v2296_v33, 0.0 }
0x10c1   :  { %2299 = vadd.xlane.f32.xlu0 %v2298_v34 }
0x10c3   :  { %v2303_v36 = vpop.permute.xlu0 %2302 }
0x10c4   :  { %v2305_v5 = vsel %vm1068_vm4, %v2303_v36, 0.0 }
0x10c5   :  { %2312 = vadd.xlane.f32.xlu0 %v2311_v38  ;;  %2306 = vadd.xlane.f32.xlu1 %v2305_v5 }
0x10c9   :  { %2317 = vadd.xlane.f32.xlu1 %v2316_v41 }
0x10cd   :  { %2333 = vadd.xlane.f32.xlu1 %v2332_v45 }
0x10d1   :  { %2403 = vadd.xlane.f32.xlu1 %v2402_v47 }
0x10f8   :  { %v2323_v56 = vpop.permute.xlu0 %2322 }
0x10f9   :  { %v2325_v57 = vsel %vm1068_vm4, %v2323_v56, 0.0  ;;  %v2358_v56 = vstv %s3204_s0 }
0x10fa   :  { %2326 = vadd.xlane.f32.xlu0 %v2325_v57 }
0x10fe   :  { %2398 = vadd.xlane.f32.xlu0 %v2397_v43 }
0x1132   :  { %v2375_v58 = vpop.xlane.xlu0 %2374 }
0x1133   :  { %v2376_v59 = vrot.slane %v2375_v58, 4 }
0x1135   :  { %v2377_v60 = vadd.f32 %v2376_v59, %v2375_v58  ;;  %v2456_v59 = vand.u32 127, %v1366_v11 }
0x1137   :  { %v2378_v61 = vrot.slane %v2377_v60, 2  ;;  %vm2467_vm8 = vcmp.eq.s32.totalorder %v2456_v59, 5  ;;  %vm2465_vm9 = vcmp.eq.s32.totalorder %v2456_v59, 4  ;;  %vm2463_vm10 = vcmp.eq.s32.totalorder %v2456_v59, 3 }
0x1138   :  { %vm2471_vm11 = vcmp.eq.s32.totalorder %v2456_v59, 7  ;;  %vm2461_vm12 = vcmp.eq.s32.totalorder %v2456_v59, 2  ;;  %vm2457_vm13 = vcmp.eq.s32.totalorder %v2456_v59, 0  ;;  %vm2459_vm14 = vcmp.eq.s32.totalorder %v2456_v59, 1 }
0x1139   :  { %v2379_v62 = vadd.f32 %v2378_v61, %v2377_v60  ;;  %vm2469_vm15 = vcmp.eq.s32.totalorder %v2456_v59, 6  ;;  %vm2475_vm0 = vcmp.eq.s32.totalorder %v2456_v59, 9  ;;  %vm2473_vm1 = vcmp.eq.s32.totalorder %v2456_v59, 8 }
0x113b   :  { %v2380_v0 = vrot.slane %v2379_v62, 1 }
0x113d   :  { %v2381_v3 = vadd.f32 %v2380_v0, %v2379_v62 }
0x113f   :  { %3205 = vpush %v2381_v3 }
0x114e   :  { %v2300_v21 = vpop.xlane.xlu0 %2299 }
0x114f   :  { %v2301_v14 = vadd.f32 %v2300_v21, %v2024_v32 }
0x1151   :  { %v2426_v18 = vrot.slane %v2301_v14, 4 }
0x1152   :  { %v2307_v4 = vpop.xlane.xlu1 %2306  ;;  %v2313_v8 = vpop.xlane.xlu0 %2312 }
0x1153   :  { %v2308_v15 = vadd.f32 %v2307_v4, %v3530_v42  ;;  %v2427_v23 = vadd.f32 %v2426_v18, %v2301_v14 }
0x1155   :  { %v2433_v19 = vrot.slane %v2308_v15, 4  ;;  %v2428_v26 = vrot.slane %v2427_v23, 2 }
0x1156   :  { %v2318_v2 = vpop.xlane.xlu1 %2317 }
0x1157   :  { %v2319_v10 = vadd.f32 %v2318_v2, %v2313_v8  ;;  %v2434_v24 = vadd.f32 %v2433_v19, %v2308_v15  ;;  %v2429_v32 = vadd.f32 %v2428_v26, %v2427_v23  ;;  %v2466_v8 = vsel %vm2465_vm9, %v2358_v56, 0.0 }
0x1159   :  { %v2544_v12 = vadd.f32 -7.351508, %v2319_v10  ;;  %v2435_v28 = vrot.slane %v2434_v24, 2  ;;  %v2430_v37 = vrot.slane %v2429_v32, 1 }
0x115a   :  { %v2334_v9 = vpop.xlane.xlu1 %2333 }
0x115b   :  { %v2412_v17 = vrot.slane %v2544_v12, 4  ;;  %v2436_v33 = vadd.f32 %v2435_v28, %v2434_v24  ;;  %v2431_v48 = vadd.f32 %v2430_v37, %v2429_v32 }
0x115d   :  { %v2413_v20 = vadd.f32 %v2544_v12, %v2412_v17  ;;  %v2437_v5 = vrot.slane %v2436_v33, 1  ;;  %v2432_v53 = vmul.f32 0.125, %v2431_v48 }
0x115e   :  { %v2404_v13 = vpop.xlane.xlu1 %2403 }
0x115f   :  { %v2405_v50 = vrot.slane %v2404_v13, 4  ;;  %v2414_v6 = vrot.slane %v2413_v20, 2  ;;  %v2438_v46 = vadd.f32 %v2437_v5, %v2436_v33  ;;  %v2474_v24 = vsel %vm2473_vm1, %v2432_v53, 0.0 }
0x1161   :  { %v2406_v22 = vadd.f32 %v2405_v50, %v2404_v13  ;;  %v2415_v29 = vadd.f32 %v2414_v6, %v2413_v20  ;;  %v2439_v54 = vmul.f32 0.125, %v2438_v46 }
0x1163   :  { %v2407_v25 = vrot.slane %v2406_v22, 2  ;;  %v2416_v42 = vrot.slane %v2415_v29, 1  ;;  %v2476_v20 = vsel %vm2475_vm0, %v2439_v54, 0.0 }
0x1164   :  { %v2481_v6 = vadd.f32 %v2476_v20, %v2474_v24 }
0x1165   :  { %v2408_v30 = vadd.f32 %v2407_v25, %v2406_v22  ;;  %v2417_v39 = vadd.f32 %v2416_v42, %v2415_v29 }
0x1167   :  { %v2409_v34 = vrot.slane %v2408_v30, 1  ;;  %v2418_v47 = vmul.f32 0.125, %v2417_v39 }
0x1169   :  { %v2410_v40 = vadd.f32 %v2409_v34, %v2408_v30  ;;  %v2443_v63 = vsub.f32 0.0, %v2418_v47  ;;  %v2441_v43 = vadd.f32 %v2432_v53, %v2418_v47  ;;  %v2470_v14 = vsel %vm2469_vm15, %v2418_v47, 0.0 }
0x116b   :  { %v2411_v49 = vmul.f32 0.125, %v2410_v40 }
0x116d   :  { %v2462_v13 = vsel %vm2461_vm12, %v2411_v49, 0.0 }
0x1170   :  { %s3206_s28 = spop %3205 }
0x1171   :  { %v2383_v62 = vstv %s3206_s28 }
0x1187   :  { %v2327_v27 = vpop.xlane.xlu0 %2326 }
0x1188   :  { %v2335_v31 = vadd.f32 %v2334_v9, %v2327_v27  ;;  %v2464_v9 = vsel %vm2463_vm10, %v2383_v62, 0.0 }
0x1189   :  { %v2478_v50 = vadd.f32 %v2464_v9, %v2462_v13 }
0x118a   :  { %v2545_v16 = vadd.f32 -7.351508, %v2335_v31 }
0x118b   :  { %v2399_v38 = vpop.xlane.xlu0 %2398 }
0x118c   :  { %v2419_v35 = vrot.slane %v2545_v16, 4  ;;  %v2447_v45 = vmul.f32 0.01, %v2399_v38  ;;  %v2460_v17 = vsel %vm2459_vm14, %v2399_v38, 0.0 }
0x118e   :  { %v2420_v36 = vadd.f32 %v2545_v16, %v2419_v35  ;;  %v2448_v1 = vadd.f32 %v2447_v45, %v2411_v49 }
0x1190   :  { %v2421_v41 = vrot.slane %v2420_v36, 2  ;;  %v2449_v58 = vadd.f32 %v2448_v1, %v2358_v56 }
0x1192   :  { %v2422_v44 = vadd.f32 %v2421_v41, %v2420_v36  ;;  %v2450_v3 = vadd.f32 %v2449_v58, %v2383_v62 }
0x1194   :  { %v2423_v51 = vrot.slane %v2422_v44, 1 }
0x1196   :  { %v2424_v52 = vadd.f32 %v2423_v51, %v2422_v44 }
0x1198   :  { %v2425_v55 = vmul.f32 0.125, %v2424_v52 }
0x119a   :  { %v2444_v57 = vsub.f32 %v2443_v63, %v2425_v55  ;;  %v2440_v7 = vadd.f32 %v2439_v54, %v2425_v55  ;;  %v2472_v10 = vsel %vm2471_vm11, %v2425_v55, 0.0 }
0x119b   :  { %v2480_v18 = vadd.f32 %v2472_v10, %v2470_v14 }
0x119c   :  { %v2442_v60 = vsub.f32 %v2440_v7, %v2441_v43  ;;  %v2445_v61 = vsub.f32 %v2444_v57, %v2432_v53 }
0x119e   :  { %v2446_v0 = vsub.f32 %v2445_v61, %v2439_v54  ;;  %v2452_v4 = vmul.f32 0.1, %v2442_v60  ;;  %v2468_v21 = vsel %vm2467_vm8, %v2442_v60, 0.0 }
0x119f   :  { %v2479_v12 = vadd.f32 %v2468_v21, %v2466_v8 }
0x11a0   :  { %v2451_v2 = vadd.f32 %v2450_v3, %v2446_v0 }
0x11a1   :  { %v2483_v22 = vadd.f32 %v2480_v18, %v2479_v12 }
0x11a2   :  { %v2453_v11 = vadd.f32 %v2452_v4, %v2451_v2 }
0x11a4   :  { %v2458_v15 = vsel %vm2457_vm13, %v2453_v11, 0.0 }
0x11a5   :  { %v2477_v19 = vadd.f32 %v2460_v17, %v2458_v15 }
0x11a7   :  { %v2482_v23 = vadd.f32 %v2478_v50, %v2477_v19 }
0x11a9   :  { %v2484_v25 = vadd.f32 %v2483_v22, %v2482_v23 }
0x11ab   :  { %v2485_v26 = vadd.f32 %v2484_v25, %v2481_v6 }
0x11ad   :  { %2487 = vst [vmem:[%s3572_s3 + $0x8] sm:$0xff] %v2485_v26 }
0x11ae   :  { %2492 = vsyncpa [#allocation3], 1 }

</bundles_post_ra>
